<compile_context>
chip_gen: v5e
topology: v5e:2x2
jax: 0.10.0
libtpu: 0.0.40
codegen_flags: <defaults>
</compile_context>

<pallas_src>
import functools

import jax
import jax.numpy as jnp
from jax.experimental import pallas as pl
from jax.experimental import pallas as _pl_unused  # noqa: F401
from jax.experimental.pallas import tpu as pltpu  # noqa: F401


# ----------------------------- fused Pallas kernel -----------------------------

def _bert_forward_kernel(
    x_ref,        # (B*S, H)  f32  summed embeddings
    mask_ref,     # (B, 1, S) f32  additive key mask (0 / -1e9)
    emb_g_ref, emb_b_ref,                     # (1, H) f32
    wqkv_ref,     # (L, H, 3H) bf16  fused Q|K|V projection
    bqkv_ref,     # (L, 1, 3H) f32
    wo_ref,       # (L, H, H)  bf16
    bo_ref,       # (L, 1, H)  f32
    ln1_g_ref, ln1_b_ref,                     # (L, 1, H) f32
    w1_ref, b1_ref,                           # (L, H, I) bf16, (L, 1, I) f32
    w2_ref, b2_ref,                           # (L, I, H) bf16, (L, 1, H) f32
    ln2_g_ref, ln2_b_ref,                     # (L, 1, H) f32
    pool_w_ref, pool_b_ref,                   # (H, H) bf16, (1, H) f32
    cls_w_ref, cls_b_ref,                     # (H, CPAD) bf16, (1, CPAD) f32
    out_ref,      # (B, CPAD) f32  CLS logits (lane-padded; sliced outside)
    *, num_layers, num_heads, batch, seq, hidden, scale, eps):

  dh = hidden // num_heads
  bf = jnp.bfloat16

  def dot(a, b):
    # bf16 MXU operands, f32 accumulation.
    return jnp.dot(a.astype(bf), b, preferred_element_type=jnp.float32)

  def layernorm(h, g, b):
    # One-pass stats: var = E[x^2] - mu^2  (halves the XLU reductions).
    mu = jnp.mean(h, axis=-1, keepdims=True)
    var = jnp.mean(h * h, axis=-1, keepdims=True) - mu * mu
    return (h - mu) * jax.lax.rsqrt(var + eps) * g + b

  add_mask = mask_ref[...]                                       # (B, 1, S) f32
  x = layernorm(x_ref[...], emb_g_ref[...], emb_b_ref[...])      # embedding LN

  for l in range(num_layers):
    # ---- fused QKV projection: one (BS,H)@(H,3H) matmul ----
    qkv = dot(x, wqkv_ref[l]) + bqkv_ref[l]                      # (BS, 3H) f32
    qkv_b = qkv.reshape(batch, seq, 3 * hidden)                  # (B, S, 3H)

    # ---- per-head attention (score/softmax/PV in f32, matmul operands bf16) ----
    ctx_heads = []
    for h in range(num_heads):
      q = qkv_b[:, :, h * dh:(h + 1) * dh].astype(bf)                    # (B,S,dh)
      k = qkv_b[:, :, hidden + h * dh: hidden + (h + 1) * dh].astype(bf)
      v = qkv_b[:, :, 2 * hidden + h * dh: 2 * hidden + (h + 1) * dh].astype(bf)
      s = jnp.einsum('bqd,bkd->bqk', q, k,
                     preferred_element_type=jnp.float32) * scale + add_mask
      s = s - jnp.max(s, axis=-1, keepdims=True)
      p = jnp.exp(s)
      # NOTE: approx EUP reciprocal; loosen tolerance slightly vs exact division.
      p = p * pl.reciprocal(jnp.sum(p, axis=-1, keepdims=True), approx=True)
      ctx_heads.append(jnp.einsum('bqk,bkd->bqd', p.astype(bf), v,
                                  preferred_element_type=jnp.float32))

    # ---- fused head-merge + output projection: one (BS,H)@(H,H) matmul ----
    ctx = jnp.concatenate(ctx_heads, axis=-1).reshape(batch * seq, hidden)
    x = layernorm(dot(ctx, wo_ref[l]) + bo_ref[l] + x,
                  ln1_g_ref[l], ln1_b_ref[l])

    # ---- feed-forward ----
    ff = dot(x, w1_ref[l]) + b1_ref[l]
    # TODO(synk): HF BERT uses the exact erf-GELU; tanh approximation used here.
    ff = jax.nn.gelu(ff, approximate=True)
    x = layernorm(dot(ff, w2_ref[l]) + b2_ref[l] + x,
                  ln2_g_ref[l], ln2_b_ref[l])

  # ---- CLS rows only -> pooler (tanh) -> classifier (dropout = identity) ----
  cls = x.reshape(batch, seq, hidden)[:, 0, :]                   # (B, H)
  pooled = jnp.tanh(dot(cls, pool_w_ref[...]) + pool_b_ref[...])
  logits = dot(pooled, cls_w_ref[...]) + cls_b_ref[...]          # (B, CPAD)
  out_ref[...] = logits.astype(out_ref.dtype)


# ------------------------------ mini-BERT model ------------------------------

class Config:
    vocab_size = 100
    hidden = 32
    layers = 2
    heads = 4
    intermediate = 64
    max_pos = 16
    type_vocab = 2
    classes = 2


def init_params(key, cfg):
    keys = iter(jax.random.split(key, 64))

    def w(shape):
        return jax.random.normal(next(keys), shape, jnp.float32) * 0.02

    H, I = cfg.hidden, cfg.intermediate
    params = {
        "word_emb": w((cfg.vocab_size, H)),
        "pos_emb": w((cfg.max_pos, H)),
        "type_emb": w((cfg.type_vocab, H)),
        "emb_ln_g": jnp.ones((H,), jnp.float32),
        "emb_ln_b": jnp.zeros((H,), jnp.float32),
        "layers": [],
        "pool_w": w((H, H)),
        "pool_b": jnp.zeros((H,), jnp.float32),
        "cls_w": w((H, cfg.classes)),
        "cls_b": jnp.zeros((cfg.classes,), jnp.float32),
    }
    for _ in range(cfg.layers):
        params["layers"].append({
            "wq": w((H, H)), "bq": jnp.zeros((H,), jnp.float32),
            "wk": w((H, H)), "bk": jnp.zeros((H,), jnp.float32),
            "wv": w((H, H)), "bv": jnp.zeros((H,), jnp.float32),
            "wo": w((H, H)), "bo": jnp.zeros((H,), jnp.float32),
            "ln1_g": jnp.ones((H,), jnp.float32), "ln1_b": jnp.zeros((H,), jnp.float32),
            "w1": w((H, I)), "b1": jnp.zeros((I,), jnp.float32),
            "w2": w((I, H)), "b2": jnp.zeros((H,), jnp.float32),
            "ln2_g": jnp.ones((H,), jnp.float32), "ln2_b": jnp.zeros((H,), jnp.float32),
        })
    return params


def _pack_params(params, cfg, cpad):
    """Host-side (trace-time) repacking: fused QKV, stacked layer weights, bf16."""
    H, I = cfg.hidden, cfg.intermediate
    C = cfg.classes
    layers = params["layers"]
    bf = jnp.bfloat16

    # Fused Q|K|V along the output (lane) dim -> one matmul per layer.
    wqkv = jnp.stack([jnp.concatenate([l["wq"], l["wk"], l["wv"]], axis=1)
                      for l in layers]).astype(bf)                 # (L, H, 3H)
    bqkv = jnp.stack([jnp.concatenate([l["bq"], l["bk"], l["bv"]]).reshape(1, 3 * H)
                      for l in layers])                            # (L, 1, 3H)
    wo = jnp.stack([l["wo"] for l in layers]).astype(bf)           # (L, H, H)
    bo = jnp.stack([l["bo"].reshape(1, H) for l in layers])

    ln1g = jnp.stack([l["ln1_g"].reshape(1, H) for l in layers])
    ln1b = jnp.stack([l["ln1_b"].reshape(1, H) for l in layers])
    w1 = jnp.stack([l["w1"] for l in layers]).astype(bf)           # (L, H, I)
    b1 = jnp.stack([l["b1"].reshape(1, I) for l in layers])
    w2 = jnp.stack([l["w2"] for l in layers]).astype(bf)           # (L, I, H)
    b2 = jnp.stack([l["b2"].reshape(1, H) for l in layers])
    ln2g = jnp.stack([l["ln2_g"].reshape(1, H) for l in layers])
    ln2b = jnp.stack([l["ln2_b"].reshape(1, H) for l in layers])

    # Classifier padded to 128 output lanes -> lane-dense final store.
    cls_w_pad = jnp.zeros((H, cpad), jnp.float32).at[:, :C].set(params["cls_w"])
    cls_b_pad = jnp.zeros((1, cpad), jnp.float32).at[0, :C].set(params["cls_b"])

    return (params["emb_ln_g"].reshape(1, H), params["emb_ln_b"].reshape(1, H),
            wqkv, bqkv, wo, bo, ln1g, ln1b, w1, b1, w2, b2, ln2g, ln2b,
            params["pool_w"].astype(bf), params["pool_b"].reshape(1, H),
            cls_w_pad.astype(bf), cls_b_pad)


def bert_sentiment_forward(params, input_ids, attention_mask, *, cfg):
    B, S = input_ids.shape
    H, nH, L = cfg.hidden, cfg.heads, cfg.layers
    dh = H // nH
    C = cfg.classes
    CPAD = 128

    # --- embeddings (gather = plain-JAX glue); token_type_ids are all zero ---
    pos_ids = jnp.arange(S)
    x = (params["word_emb"][input_ids]
         + params["pos_emb"][pos_ids][None, :, :]
         + params["type_emb"][0][None, None, :])
    x2 = x.reshape(B * S, H).astype(jnp.float32)

    # Per-sequence additive key mask (B, 1, S): 0 for real tokens, -1e9 for pad.
    add_mask = jnp.where(attention_mask.astype(bool), 0.0, -1e9)
    add_mask = add_mask.astype(jnp.float32)[:, None, :]

    packed = _pack_params(params, cfg, CPAD)

    kernel = functools.partial(
        _bert_forward_kernel,
        num_layers=L, num_heads=nH, batch=B, seq=S, hidden=H,
        scale=1.0 / float(dh) ** 0.5, eps=1e-12)

    # Single fused pallas_call: no grid — every operand is a full-array VMEM
    # block, DMA'd exactly once (total footprint ≪ 1 MiB at these shapes).
    logits_pad = pl.pallas_call(
        kernel,
        out_shape=jax.ShapeDtypeStruct((B, CPAD), jnp.float32),
    )(x2, add_mask, *packed)

    return logits_pad[:, :C]


# ----------------------------------- main -----------------------------------

if __name__ == "__main__":
    cfg = Config()
    key = jax.random.PRNGKey(0)
    pkey, ikey = jax.random.split(key)
    params = init_params(pkey, cfg)

    B, S = 2, 8
    input_ids = jax.random.randint(ikey, (B, S), 0, cfg.vocab_size, dtype=jnp.int32)
    attention_mask = jnp.concatenate(
        [jnp.ones((B, 6), jnp.int32), jnp.zeros((B, 2), jnp.int32)], axis=1)

    fwd = jax.jit(functools.partial(bert_sentiment_forward, cfg=cfg))
    logits = fwd(params, input_ids, attention_mask)
    jax.block_until_ready(logits)

    assert logits.shape == (B, cfg.classes), logits.shape
    assert bool(jnp.all(jnp.isfinite(logits)))
    print("KERNEL_OK")
</pallas_src>

<mosaic_0001>
module attributes {stable_mosaic.version = 11 : i64} {
  func.func @_bert_forward_kernel(%arg0: memref<16x32xf32, #tpu.memory_space<vmem>>, %arg1: memref<2x1x8xf32, #tpu.memory_space<vmem>>, %arg2: memref<1x32xf32, #tpu.memory_space<vmem>>, %arg3: memref<1x32xf32, #tpu.memory_space<vmem>>, %arg4: memref<2x32x96xbf16, #tpu.memory_space<vmem>>, %arg5: memref<2x1x96xf32, #tpu.memory_space<vmem>>, %arg6: memref<2x32x32xbf16, #tpu.memory_space<vmem>>, %arg7: memref<2x1x32xf32, #tpu.memory_space<vmem>>, %arg8: memref<2x1x32xf32, #tpu.memory_space<vmem>>, %arg9: memref<2x1x32xf32, #tpu.memory_space<vmem>>, %arg10: memref<2x32x64xbf16, #tpu.memory_space<vmem>>, %arg11: memref<2x1x64xf32, #tpu.memory_space<vmem>>, %arg12: memref<2x64x32xbf16, #tpu.memory_space<vmem>>, %arg13: memref<2x1x32xf32, #tpu.memory_space<vmem>>, %arg14: memref<2x1x32xf32, #tpu.memory_space<vmem>>, %arg15: memref<2x1x32xf32, #tpu.memory_space<vmem>>, %arg16: memref<32x32xbf16, #tpu.memory_space<vmem>>, %arg17: memref<1x32xf32, #tpu.memory_space<vmem>>, %arg18: memref<32x128xbf16, #tpu.memory_space<vmem>>, %arg19: memref<1x128xf32, #tpu.memory_space<vmem>>, %arg20: memref<2x128xf32, #tpu.memory_space<vmem>>) attributes {dimension_semantics = [], scalar_prefetch = 0 : i64, scratch_operands = 0 : i64, tpu.core_type = #tpu.core_type<tc>} {
    %c0 = arith.constant 0 : index
    %c0_0 = arith.constant 0 : index
    %c0_1 = arith.constant 0 : index
    %0 = vector.load %arg1[%c0, %c0_0, %c0_1] : memref<2x1x8xf32, #tpu.memory_space<vmem>>, vector<2x1x8xf32>
    %c0_2 = arith.constant 0 : index
    %c0_3 = arith.constant 0 : index
    %1 = vector.load %arg0[%c0_2, %c0_3] : memref<16x32xf32, #tpu.memory_space<vmem>>, vector<16x32xf32>
    %c0_4 = arith.constant 0 : index
    %c0_5 = arith.constant 0 : index
    %2 = vector.load %arg2[%c0_4, %c0_5] : memref<1x32xf32, #tpu.memory_space<vmem>>, vector<1x32xf32>
    %c0_6 = arith.constant 0 : index
    %c0_7 = arith.constant 0 : index
    %3 = vector.load %arg3[%c0_6, %c0_7] : memref<1x32xf32, #tpu.memory_space<vmem>>, vector<1x32xf32>
    %cst = arith.constant dense<0.000000e+00> : vector<16xf32>
    %4 = vector.multi_reduction <add>, %1, %cst [1] : vector<16x32xf32> to vector<16xf32>
    %5 = vector.shape_cast %4 : vector<16xf32> to vector<16x1xf32>
    %cst_8 = arith.constant 3.200000e+01 : f32
    %6 = vector.broadcast %cst_8 : f32 to vector<16x1xf32>
    %7 = arith.divf %5, %6 : vector<16x1xf32>
    %8 = arith.mulf %1, %1 : vector<16x32xf32>
    %cst_9 = arith.constant dense<0.000000e+00> : vector<16xf32>
    %9 = vector.multi_reduction <add>, %8, %cst_9 [1] : vector<16x32xf32> to vector<16xf32>
    %10 = vector.shape_cast %9 : vector<16xf32> to vector<16x1xf32>
    %cst_10 = arith.constant 3.200000e+01 : f32
    %11 = vector.broadcast %cst_10 : f32 to vector<16x1xf32>
    %12 = arith.divf %10, %11 : vector<16x1xf32>
    %13 = arith.mulf %7, %7 : vector<16x1xf32>
    %14 = arith.subf %12, %13 : vector<16x1xf32>
    %15 = vector.broadcast %7 : vector<16x1xf32> to vector<16x32xf32>
    %16 = arith.subf %1, %15 : vector<16x32xf32>
    %cst_11 = arith.constant 9.99999996E-13 : f32
    %17 = vector.broadcast %cst_11 : f32 to vector<16x1xf32>
    %18 = arith.addf %14, %17 : vector<16x1xf32>
    %19 = math.rsqrt %18 : vector<16x1xf32>
    %20 = vector.broadcast %19 : vector<16x1xf32> to vector<16x32xf32>
    %21 = arith.mulf %16, %20 : vector<16x32xf32>
    %22 = vector.broadcast %2 : vector<1x32xf32> to vector<16x32xf32>
    %23 = arith.mulf %21, %22 : vector<16x32xf32>
    %24 = vector.broadcast %3 : vector<1x32xf32> to vector<16x32xf32>
    %25 = arith.addf %23, %24 : vector<16x32xf32>
    %c0_12 = arith.constant 0 : index
    %c0_13 = arith.constant 0 : index
    %c0_14 = arith.constant 0 : index
    %26 = vector.load %arg4[%c0_12, %c0_13, %c0_14] : memref<2x32x96xbf16, #tpu.memory_space<vmem>>, vector<1x32x96xbf16>
    %27 = vector.shape_cast %26 : vector<1x32x96xbf16> to vector<32x96xbf16>
    %28 = arith.truncf %25 : vector<16x32xf32> to vector<16x32xbf16>
    %cst_15 = arith.constant dense<0.000000e+00> : vector<16x96xf32>
    %29 = tpu.matmul %28, %27, %cst_15 {dimension_numbers = #tpu.dot_dimension_numbers<[1], [0], [0], [1], [0, 0, 1, 1], [], []>} : vector<16x32xbf16>, vector<32x96xbf16>, vector<16x96xf32> -> vector<16x96xf32>
    %c0_16 = arith.constant 0 : index
    %c0_17 = arith.constant 0 : index
    %c0_18 = arith.constant 0 : index
    %30 = vector.load %arg5[%c0_16, %c0_17, %c0_18] : memref<2x1x96xf32, #tpu.memory_space<vmem>>, vector<1x1x96xf32>
    %31 = vector.shape_cast %30 : vector<1x1x96xf32> to vector<1x96xf32>
    %32 = vector.broadcast %31 : vector<1x96xf32> to vector<16x96xf32>
    %33 = arith.addf %29, %32 : vector<16x96xf32>
    %34 = vector.shape_cast %33 : vector<16x96xf32> to vector<2x8x96xf32>
    %35 = vector.extract_strided_slice %34 {offsets = [0, 0, 0], sizes = [2, 8, 8], strides = [1, 1, 1]} : vector<2x8x96xf32> to vector<2x8x8xf32>
    %36 = arith.truncf %35 : vector<2x8x8xf32> to vector<2x8x8xbf16>
    %37 = vector.extract_strided_slice %34 {offsets = [0, 0, 32], sizes = [2, 8, 8], strides = [1, 1, 1]} : vector<2x8x96xf32> to vector<2x8x8xf32>
    %38 = arith.truncf %37 : vector<2x8x8xf32> to vector<2x8x8xbf16>
    %39 = vector.extract_strided_slice %34 {offsets = [0, 0, 64], sizes = [2, 8, 8], strides = [1, 1, 1]} : vector<2x8x96xf32> to vector<2x8x8xf32>
    %40 = arith.truncf %39 : vector<2x8x8xf32> to vector<2x8x8xbf16>
    "tpu.trace_start"() <{level = 10 : i32, message = "bqd,bkd->bqk"}> : () -> ()
    %cst_19 = arith.constant dense<0.000000e+00> : vector<2x8x8xf32>
    %41 = tpu.matmul %36, %38, %cst_19 {dimension_numbers = #tpu.dot_dimension_numbers<[2], [2], [1], [1], [0, 0, 0, 1, 1, 1], [0], [0]>} : vector<2x8x8xbf16>, vector<2x8x8xbf16>, vector<2x8x8xf32> -> vector<2x8x8xf32>
    "tpu.trace_stop"() : () -> ()
    %cst_20 = arith.constant 0.353553385 : f32
    %42 = vector.broadcast %cst_20 : f32 to vector<2x8x8xf32>
    %43 = arith.mulf %41, %42 : vector<2x8x8xf32>
    %44 = vector.broadcast %0 : vector<2x1x8xf32> to vector<2x8x8xf32>
    %45 = arith.addf %43, %44 : vector<2x8x8xf32>
    %cst_21 = arith.constant dense<0xFF800000> : vector<2x8xf32>
    %46 = vector.multi_reduction <maximumf>, %45, %cst_21 [2] : vector<2x8x8xf32> to vector<2x8xf32>
    %47 = vector.shape_cast %46 : vector<2x8xf32> to vector<2x8x1xf32>
    %48 = vector.broadcast %47 : vector<2x8x1xf32> to vector<2x8x8xf32>
    %49 = arith.subf %45, %48 : vector<2x8x8xf32>
    %50 = math.exp %49 : vector<2x8x8xf32>
    %cst_22 = arith.constant dense<0.000000e+00> : vector<2x8xf32>
    %51 = vector.multi_reduction <add>, %50, %cst_22 [2] : vector<2x8x8xf32> to vector<2x8xf32>
    %52 = vector.shape_cast %51 : vector<2x8xf32> to vector<2x8x1xf32>
    %53 = tpu.reciprocal %52 {approx = true} : vector<2x8x1xf32> -> vector<2x8x1xf32>
    %54 = vector.broadcast %53 : vector<2x8x1xf32> to vector<2x8x8xf32>
    %55 = arith.mulf %50, %54 : vector<2x8x8xf32>
    %56 = arith.truncf %55 : vector<2x8x8xf32> to vector<2x8x8xbf16>
    "tpu.trace_start"() <{level = 10 : i32, message = "bqk,bkd->bqd"}> : () -> ()
    %cst_23 = arith.constant dense<0.000000e+00> : vector<2x8x8xf32>
    %57 = tpu.matmul %56, %40, %cst_23 {dimension_numbers = #tpu.dot_dimension_numbers<[2], [1], [1], [2], [0, 0, 0, 1, 1, 2], [0], [0]>} : vector<2x8x8xbf16>, vector<2x8x8xbf16>, vector<2x8x8xf32> -> vector<2x8x8xf32>
    "tpu.trace_stop"() : () -> ()
    %58 = vector.extract_strided_slice %34 {offsets = [0, 0, 8], sizes = [2, 8, 8], strides = [1, 1, 1]} : vector<2x8x96xf32> to vector<2x8x8xf32>
    %59 = arith.truncf %58 : vector<2x8x8xf32> to vector<2x8x8xbf16>
    %60 = vector.extract_strided_slice %34 {offsets = [0, 0, 40], sizes = [2, 8, 8], strides = [1, 1, 1]} : vector<2x8x96xf32> to vector<2x8x8xf32>
    %61 = arith.truncf %60 : vector<2x8x8xf32> to vector<2x8x8xbf16>
    %62 = vector.extract_strided_slice %34 {offsets = [0, 0, 72], sizes = [2, 8, 8], strides = [1, 1, 1]} : vector<2x8x96xf32> to vector<2x8x8xf32>
    %63 = arith.truncf %62 : vector<2x8x8xf32> to vector<2x8x8xbf16>
    "tpu.trace_start"() <{level = 10 : i32, message = "bqd,bkd->bqk"}> : () -> ()
    %cst_24 = arith.constant dense<0.000000e+00> : vector<2x8x8xf32>
    %64 = tpu.matmul %59, %61, %cst_24 {dimension_numbers = #tpu.dot_dimension_numbers<[2], [2], [1], [1], [0, 0, 0, 1, 1, 1], [0], [0]>} : vector<2x8x8xbf16>, vector<2x8x8xbf16>, vector<2x8x8xf32> -> vector<2x8x8xf32>
    "tpu.trace_stop"() : () -> ()
    %cst_25 = arith.constant 0.353553385 : f32
    %65 = vector.broadcast %cst_25 : f32 to vector<2x8x8xf32>
    %66 = arith.mulf %64, %65 : vector<2x8x8xf32>
    %67 = vector.broadcast %0 : vector<2x1x8xf32> to vector<2x8x8xf32>
    %68 = arith.addf %66, %67 : vector<2x8x8xf32>
    %cst_26 = arith.constant dense<0xFF800000> : vector<2x8xf32>
    %69 = vector.multi_reduction <maximumf>, %68, %cst_26 [2] : vector<2x8x8xf32> to vector<2x8xf32>
    %70 = vector.shape_cast %69 : vector<2x8xf32> to vector<2x8x1xf32>
    %71 = vector.broadcast %70 : vector<2x8x1xf32> to vector<2x8x8xf32>
    %72 = arith.subf %68, %71 : vector<2x8x8xf32>
    %73 = math.exp %72 : vector<2x8x8xf32>
    %cst_27 = arith.constant dense<0.000000e+00> : vector<2x8xf32>
    %74 = vector.multi_reduction <add>, %73, %cst_27 [2] : vector<2x8x8xf32> to vector<2x8xf32>
    %75 = vector.shape_cast %74 : vector<2x8xf32> to vector<2x8x1xf32>
    %76 = tpu.reciprocal %75 {approx = true} : vector<2x8x1xf32> -> vector<2x8x1xf32>
    %77 = vector.broadcast %76 : vector<2x8x1xf32> to vector<2x8x8xf32>
    %78 = arith.mulf %73, %77 : vector<2x8x8xf32>
    %79 = arith.truncf %78 : vector<2x8x8xf32> to vector<2x8x8xbf16>
    "tpu.trace_start"() <{level = 10 : i32, message = "bqk,bkd->bqd"}> : () -> ()
    %cst_28 = arith.constant dense<0.000000e+00> : vector<2x8x8xf32>
    %80 = tpu.matmul %79, %63, %cst_28 {dimension_numbers = #tpu.dot_dimension_numbers<[2], [1], [1], [2], [0, 0, 0, 1, 1, 2], [0], [0]>} : vector<2x8x8xbf16>, vector<2x8x8xbf16>, vector<2x8x8xf32> -> vector<2x8x8xf32>
    "tpu.trace_stop"() : () -> ()
    %81 = vector.extract_strided_slice %34 {offsets = [0, 0, 16], sizes = [2, 8, 8], strides = [1, 1, 1]} : vector<2x8x96xf32> to vector<2x8x8xf32>
    %82 = arith.truncf %81 : vector<2x8x8xf32> to vector<2x8x8xbf16>
    %83 = vector.extract_strided_slice %34 {offsets = [0, 0, 48], sizes = [2, 8, 8], strides = [1, 1, 1]} : vector<2x8x96xf32> to vector<2x8x8xf32>
    %84 = arith.truncf %83 : vector<2x8x8xf32> to vector<2x8x8xbf16>
    %85 = vector.extract_strided_slice %34 {offsets = [0, 0, 80], sizes = [2, 8, 8], strides = [1, 1, 1]} : vector<2x8x96xf32> to vector<2x8x8xf32>
    %86 = arith.truncf %85 : vector<2x8x8xf32> to vector<2x8x8xbf16>
    "tpu.trace_start"() <{level = 10 : i32, message = "bqd,bkd->bqk"}> : () -> ()
    %cst_29 = arith.constant dense<0.000000e+00> : vector<2x8x8xf32>
    %87 = tpu.matmul %82, %84, %cst_29 {dimension_numbers = #tpu.dot_dimension_numbers<[2], [2], [1], [1], [0, 0, 0, 1, 1, 1], [0], [0]>} : vector<2x8x8xbf16>, vector<2x8x8xbf16>, vector<2x8x8xf32> -> vector<2x8x8xf32>
    "tpu.trace_stop"() : () -> ()
    %cst_30 = arith.constant 0.353553385 : f32
    %88 = vector.broadcast %cst_30 : f32 to vector<2x8x8xf32>
    %89 = arith.mulf %87, %88 : vector<2x8x8xf32>
    %90 = vector.broadcast %0 : vector<2x1x8xf32> to vector<2x8x8xf32>
    %91 = arith.addf %89, %90 : vector<2x8x8xf32>
    %cst_31 = arith.constant dense<0xFF800000> : vector<2x8xf32>
    %92 = vector.multi_reduction <maximumf>, %91, %cst_31 [2] : vector<2x8x8xf32> to vector<2x8xf32>
    %93 = vector.shape_cast %92 : vector<2x8xf32> to vector<2x8x1xf32>
    %94 = vector.broadcast %93 : vector<2x8x1xf32> to vector<2x8x8xf32>
    %95 = arith.subf %91, %94 : vector<2x8x8xf32>
    %96 = math.exp %95 : vector<2x8x8xf32>
    %cst_32 = arith.constant dense<0.000000e+00> : vector<2x8xf32>
    %97 = vector.multi_reduction <add>, %96, %cst_32 [2] : vector<2x8x8xf32> to vector<2x8xf32>
    %98 = vector.shape_cast %97 : vector<2x8xf32> to vector<2x8x1xf32>
    %99 = tpu.reciprocal %98 {approx = true} : vector<2x8x1xf32> -> vector<2x8x1xf32>
    %100 = vector.broadcast %99 : vector<2x8x1xf32> to vector<2x8x8xf32>
    %101 = arith.mulf %96, %100 : vector<2x8x8xf32>
    %102 = arith.truncf %101 : vector<2x8x8xf32> to vector<2x8x8xbf16>
    "tpu.trace_start"() <{level = 10 : i32, message = "bqk,bkd->bqd"}> : () -> ()
    %cst_33 = arith.constant dense<0.000000e+00> : vector<2x8x8xf32>
    %103 = tpu.matmul %102, %86, %cst_33 {dimension_numbers = #tpu.dot_dimension_numbers<[2], [1], [1], [2], [0, 0, 0, 1, 1, 2], [0], [0]>} : vector<2x8x8xbf16>, vector<2x8x8xbf16>, vector<2x8x8xf32> -> vector<2x8x8xf32>
    "tpu.trace_stop"() : () -> ()
    %104 = vector.extract_strided_slice %34 {offsets = [0, 0, 24], sizes = [2, 8, 8], strides = [1, 1, 1]} : vector<2x8x96xf32> to vector<2x8x8xf32>
    %105 = arith.truncf %104 : vector<2x8x8xf32> to vector<2x8x8xbf16>
    %106 = vector.extract_strided_slice %34 {offsets = [0, 0, 56], sizes = [2, 8, 8], strides = [1, 1, 1]} : vector<2x8x96xf32> to vector<2x8x8xf32>
    %107 = arith.truncf %106 : vector<2x8x8xf32> to vector<2x8x8xbf16>
    %108 = vector.extract_strided_slice %34 {offsets = [0, 0, 88], sizes = [2, 8, 8], strides = [1, 1, 1]} : vector<2x8x96xf32> to vector<2x8x8xf32>
    %109 = arith.truncf %108 : vector<2x8x8xf32> to vector<2x8x8xbf16>
    "tpu.trace_start"() <{level = 10 : i32, message = "bqd,bkd->bqk"}> : () -> ()
    %cst_34 = arith.constant dense<0.000000e+00> : vector<2x8x8xf32>
    %110 = tpu.matmul %105, %107, %cst_34 {dimension_numbers = #tpu.dot_dimension_numbers<[2], [2], [1], [1], [0, 0, 0, 1, 1, 1], [0], [0]>} : vector<2x8x8xbf16>, vector<2x8x8xbf16>, vector<2x8x8xf32> -> vector<2x8x8xf32>
    "tpu.trace_stop"() : () -> ()
    %cst_35 = arith.constant 0.353553385 : f32
    %111 = vector.broadcast %cst_35 : f32 to vector<2x8x8xf32>
    %112 = arith.mulf %110, %111 : vector<2x8x8xf32>
    %113 = vector.broadcast %0 : vector<2x1x8xf32> to vector<2x8x8xf32>
    %114 = arith.addf %112, %113 : vector<2x8x8xf32>
    %cst_36 = arith.constant dense<0xFF800000> : vector<2x8xf32>
    %115 = vector.multi_reduction <maximumf>, %114, %cst_36 [2] : vector<2x8x8xf32> to vector<2x8xf32>
    %116 = vector.shape_cast %115 : vector<2x8xf32> to vector<2x8x1xf32>
    %117 = vector.broadcast %116 : vector<2x8x1xf32> to vector<2x8x8xf32>
    %118 = arith.subf %114, %117 : vector<2x8x8xf32>
    %119 = math.exp %118 : vector<2x8x8xf32>
    %cst_37 = arith.constant dense<0.000000e+00> : vector<2x8xf32>
    %120 = vector.multi_reduction <add>, %119, %cst_37 [2] : vector<2x8x8xf32> to vector<2x8xf32>
    %121 = vector.shape_cast %120 : vector<2x8xf32> to vector<2x8x1xf32>
    %122 = tpu.reciprocal %121 {approx = true} : vector<2x8x1xf32> -> vector<2x8x1xf32>
    %123 = vector.broadcast %122 : vector<2x8x1xf32> to vector<2x8x8xf32>
    %124 = arith.mulf %119, %123 : vector<2x8x8xf32>
    %125 = arith.truncf %124 : vector<2x8x8xf32> to vector<2x8x8xbf16>
    "tpu.trace_start"() <{level = 10 : i32, message = "bqk,bkd->bqd"}> : () -> ()
    %cst_38 = arith.constant dense<0.000000e+00> : vector<2x8x8xf32>
    %126 = tpu.matmul %125, %109, %cst_38 {dimension_numbers = #tpu.dot_dimension_numbers<[2], [1], [1], [2], [0, 0, 0, 1, 1, 2], [0], [0]>} : vector<2x8x8xbf16>, vector<2x8x8xbf16>, vector<2x8x8xf32> -> vector<2x8x8xf32>
    "tpu.trace_stop"() : () -> ()
    %127 = tpu.concatenate %57, %80, %103, %126 in 2 : vector<2x8x8xf32>, vector<2x8x8xf32>, vector<2x8x8xf32>, vector<2x8x8xf32> -> vector<2x8x32xf32>
    %128 = vector.shape_cast %127 : vector<2x8x32xf32> to vector<16x32xf32>
    %c0_39 = arith.constant 0 : index
    %c0_40 = arith.constant 0 : index
    %c0_41 = arith.constant 0 : index
    %129 = vector.load %arg6[%c0_39, %c0_40, %c0_41] : memref<2x32x32xbf16, #tpu.memory_space<vmem>>, vector<1x32x32xbf16>
    %130 = vector.shape_cast %129 : vector<1x32x32xbf16> to vector<32x32xbf16>
    %131 = arith.truncf %128 : vector<16x32xf32> to vector<16x32xbf16>
    %cst_42 = arith.constant dense<0.000000e+00> : vector<16x32xf32>
    %132 = tpu.matmul %131, %130, %cst_42 {dimension_numbers = #tpu.dot_dimension_numbers<[1], [0], [0], [1], [0, 0, 1, 1], [], []>} : vector<16x32xbf16>, vector<32x32xbf16>, vector<16x32xf32> -> vector<16x32xf32>
    %c0_43 = arith.constant 0 : index
    %c0_44 = arith.constant 0 : index
    %c0_45 = arith.constant 0 : index
    %133 = vector.load %arg7[%c0_43, %c0_44, %c0_45] : memref<2x1x32xf32, #tpu.memory_space<vmem>>, vector<1x1x32xf32>
    %134 = vector.shape_cast %133 : vector<1x1x32xf32> to vector<1x32xf32>
    %135 = vector.broadcast %134 : vector<1x32xf32> to vector<16x32xf32>
    %136 = arith.addf %132, %135 : vector<16x32xf32>
    %137 = arith.addf %136, %25 : vector<16x32xf32>
    %c0_46 = arith.constant 0 : index
    %c0_47 = arith.constant 0 : index
    %c0_48 = arith.constant 0 : index
    %138 = vector.load %arg8[%c0_46, %c0_47, %c0_48] : memref<2x1x32xf32, #tpu.memory_space<vmem>>, vector<1x1x32xf32>
    %139 = vector.shape_cast %138 : vector<1x1x32xf32> to vector<1x32xf32>
    %c0_49 = arith.constant 0 : index
    %c0_50 = arith.constant 0 : index
    %c0_51 = arith.constant 0 : index
    %140 = vector.load %arg9[%c0_49, %c0_50, %c0_51] : memref<2x1x32xf32, #tpu.memory_space<vmem>>, vector<1x1x32xf32>
    %141 = vector.shape_cast %140 : vector<1x1x32xf32> to vector<1x32xf32>
    %cst_52 = arith.constant dense<0.000000e+00> : vector<16xf32>
    %142 = vector.multi_reduction <add>, %137, %cst_52 [1] : vector<16x32xf32> to vector<16xf32>
    %143 = vector.shape_cast %142 : vector<16xf32> to vector<16x1xf32>
    %cst_53 = arith.constant 3.200000e+01 : f32
    %144 = vector.broadcast %cst_53 : f32 to vector<16x1xf32>
    %145 = arith.divf %143, %144 : vector<16x1xf32>
    %146 = arith.mulf %137, %137 : vector<16x32xf32>
    %cst_54 = arith.constant dense<0.000000e+00> : vector<16xf32>
    %147 = vector.multi_reduction <add>, %146, %cst_54 [1] : vector<16x32xf32> to vector<16xf32>
    %148 = vector.shape_cast %147 : vector<16xf32> to vector<16x1xf32>
    %cst_55 = arith.constant 3.200000e+01 : f32
    %149 = vector.broadcast %cst_55 : f32 to vector<16x1xf32>
    %150 = arith.divf %148, %149 : vector<16x1xf32>
    %151 = arith.mulf %145, %145 : vector<16x1xf32>
    %152 = arith.subf %150, %151 : vector<16x1xf32>
    %153 = vector.broadcast %145 : vector<16x1xf32> to vector<16x32xf32>
    %154 = arith.subf %137, %153 : vector<16x32xf32>
    %cst_56 = arith.constant 9.99999996E-13 : f32
    %155 = vector.broadcast %cst_56 : f32 to vector<16x1xf32>
    %156 = arith.addf %152, %155 : vector<16x1xf32>
    %157 = math.rsqrt %156 : vector<16x1xf32>
    %158 = vector.broadcast %157 : vector<16x1xf32> to vector<16x32xf32>
    %159 = arith.mulf %154, %158 : vector<16x32xf32>
    %160 = vector.broadcast %139 : vector<1x32xf32> to vector<16x32xf32>
    %161 = arith.mulf %159, %160 : vector<16x32xf32>
    %162 = vector.broadcast %141 : vector<1x32xf32> to vector<16x32xf32>
    %163 = arith.addf %161, %162 : vector<16x32xf32>
    %c0_57 = arith.constant 0 : index
    %c0_58 = arith.constant 0 : index
    %c0_59 = arith.constant 0 : index
    %164 = vector.load %arg10[%c0_57, %c0_58, %c0_59] : memref<2x32x64xbf16, #tpu.memory_space<vmem>>, vector<1x32x64xbf16>
    %165 = vector.shape_cast %164 : vector<1x32x64xbf16> to vector<32x64xbf16>
    %166 = arith.truncf %163 : vector<16x32xf32> to vector<16x32xbf16>
    %cst_60 = arith.constant dense<0.000000e+00> : vector<16x64xf32>
    %167 = tpu.matmul %166, %165, %cst_60 {dimension_numbers = #tpu.dot_dimension_numbers<[1], [0], [0], [1], [0, 0, 1, 1], [], []>} : vector<16x32xbf16>, vector<32x64xbf16>, vector<16x64xf32> -> vector<16x64xf32>
    %c0_61 = arith.constant 0 : index
    %c0_62 = arith.constant 0 : index
    %c0_63 = arith.constant 0 : index
    %168 = vector.load %arg11[%c0_61, %c0_62, %c0_63] : memref<2x1x64xf32, #tpu.memory_space<vmem>>, vector<1x1x64xf32>
    %169 = vector.shape_cast %168 : vector<1x1x64xf32> to vector<1x64xf32>
    %170 = vector.broadcast %169 : vector<1x64xf32> to vector<16x64xf32>
    %171 = arith.addf %167, %170 : vector<16x64xf32>
    %172 = arith.mulf %171, %171 : vector<16x64xf32>
    %173 = arith.mulf %171, %172 : vector<16x64xf32>
    %cst_64 = arith.constant 4.471500e-02 : f32
    %174 = vector.broadcast %cst_64 : f32 to vector<16x64xf32>
    %175 = arith.mulf %174, %173 : vector<16x64xf32>
    %176 = arith.addf %171, %175 : vector<16x64xf32>
    %cst_65 = arith.constant 0.797884583 : f32
    %177 = vector.broadcast %cst_65 : f32 to vector<16x64xf32>
    %178 = arith.mulf %177, %176 : vector<16x64xf32>
    %179 = math.tanh %178 : vector<16x64xf32>
    %cst_66 = arith.constant 1.000000e+00 : f32
    %180 = vector.broadcast %cst_66 : f32 to vector<16x64xf32>
    %181 = arith.addf %180, %179 : vector<16x64xf32>
    %cst_67 = arith.constant 5.000000e-01 : f32
    %182 = vector.broadcast %cst_67 : f32 to vector<16x64xf32>
    %183 = arith.mulf %182, %181 : vector<16x64xf32>
    %184 = arith.mulf %171, %183 : vector<16x64xf32>
    %c0_68 = arith.constant 0 : index
    %c0_69 = arith.constant 0 : index
    %c0_70 = arith.constant 0 : index
    %185 = vector.load %arg12[%c0_68, %c0_69, %c0_70] : memref<2x64x32xbf16, #tpu.memory_space<vmem>>, vector<1x64x32xbf16>
    %186 = vector.shape_cast %185 : vector<1x64x32xbf16> to vector<64x32xbf16>
    %187 = arith.truncf %184 : vector<16x64xf32> to vector<16x64xbf16>
    %cst_71 = arith.constant dense<0.000000e+00> : vector<16x32xf32>
    %188 = tpu.matmul %187, %186, %cst_71 {dimension_numbers = #tpu.dot_dimension_numbers<[1], [0], [0], [1], [0, 0, 1, 1], [], []>} : vector<16x64xbf16>, vector<64x32xbf16>, vector<16x32xf32> -> vector<16x32xf32>
    %c0_72 = arith.constant 0 : index
    %c0_73 = arith.constant 0 : index
    %c0_74 = arith.constant 0 : index
    %189 = vector.load %arg13[%c0_72, %c0_73, %c0_74] : memref<2x1x32xf32, #tpu.memory_space<vmem>>, vector<1x1x32xf32>
    %190 = vector.shape_cast %189 : vector<1x1x32xf32> to vector<1x32xf32>
    %191 = vector.broadcast %190 : vector<1x32xf32> to vector<16x32xf32>
    %192 = arith.addf %188, %191 : vector<16x32xf32>
    %193 = arith.addf %192, %163 : vector<16x32xf32>
    %c0_75 = arith.constant 0 : index
    %c0_76 = arith.constant 0 : index
    %c0_77 = arith.constant 0 : index
    %194 = vector.load %arg14[%c0_75, %c0_76, %c0_77] : memref<2x1x32xf32, #tpu.memory_space<vmem>>, vector<1x1x32xf32>
    %195 = vector.shape_cast %194 : vector<1x1x32xf32> to vector<1x32xf32>
    %c0_78 = arith.constant 0 : index
    %c0_79 = arith.constant 0 : index
    %c0_80 = arith.constant 0 : index
    %196 = vector.load %arg15[%c0_78, %c0_79, %c0_80] : memref<2x1x32xf32, #tpu.memory_space<vmem>>, vector<1x1x32xf32>
    %197 = vector.shape_cast %196 : vector<1x1x32xf32> to vector<1x32xf32>
    %cst_81 = arith.constant dense<0.000000e+00> : vector<16xf32>
    %198 = vector.multi_reduction <add>, %193, %cst_81 [1] : vector<16x32xf32> to vector<16xf32>
    %199 = vector.shape_cast %198 : vector<16xf32> to vector<16x1xf32>
    %cst_82 = arith.constant 3.200000e+01 : f32
    %200 = vector.broadcast %cst_82 : f32 to vector<16x1xf32>
    %201 = arith.divf %199, %200 : vector<16x1xf32>
    %202 = arith.mulf %193, %193 : vector<16x32xf32>
    %cst_83 = arith.constant dense<0.000000e+00> : vector<16xf32>
    %203 = vector.multi_reduction <add>, %202, %cst_83 [1] : vector<16x32xf32> to vector<16xf32>
    %204 = vector.shape_cast %203 : vector<16xf32> to vector<16x1xf32>
    %cst_84 = arith.constant 3.200000e+01 : f32
    %205 = vector.broadcast %cst_84 : f32 to vector<16x1xf32>
    %206 = arith.divf %204, %205 : vector<16x1xf32>
    %207 = arith.mulf %201, %201 : vector<16x1xf32>
    %208 = arith.subf %206, %207 : vector<16x1xf32>
    %209 = vector.broadcast %201 : vector<16x1xf32> to vector<16x32xf32>
    %210 = arith.subf %193, %209 : vector<16x32xf32>
    %cst_85 = arith.constant 9.99999996E-13 : f32
    %211 = vector.broadcast %cst_85 : f32 to vector<16x1xf32>
    %212 = arith.addf %208, %211 : vector<16x1xf32>
    %213 = math.rsqrt %212 : vector<16x1xf32>
    %214 = vector.broadcast %213 : vector<16x1xf32> to vector<16x32xf32>
    %215 = arith.mulf %210, %214 : vector<16x32xf32>
    %216 = vector.broadcast %195 : vector<1x32xf32> to vector<16x32xf32>
    %217 = arith.mulf %215, %216 : vector<16x32xf32>
    %218 = vector.broadcast %197 : vector<1x32xf32> to vector<16x32xf32>
    %219 = arith.addf %217, %218 : vector<16x32xf32>
    %c1 = arith.constant 1 : index
    %c0_86 = arith.constant 0 : index
    %c0_87 = arith.constant 0 : index
    %220 = vector.load %arg4[%c1, %c0_86, %c0_87] : memref<2x32x96xbf16, #tpu.memory_space<vmem>>, vector<1x32x96xbf16>
    %221 = vector.shape_cast %220 : vector<1x32x96xbf16> to vector<32x96xbf16>
    %222 = arith.truncf %219 : vector<16x32xf32> to vector<16x32xbf16>
    %cst_88 = arith.constant dense<0.000000e+00> : vector<16x96xf32>
    %223 = tpu.matmul %222, %221, %cst_88 {dimension_numbers = #tpu.dot_dimension_numbers<[1], [0], [0], [1], [0, 0, 1, 1], [], []>} : vector<16x32xbf16>, vector<32x96xbf16>, vector<16x96xf32> -> vector<16x96xf32>
    %c1_89 = arith.constant 1 : index
    %c0_90 = arith.constant 0 : index
    %c0_91 = arith.constant 0 : index
    %224 = vector.load %arg5[%c1_89, %c0_90, %c0_91] : memref<2x1x96xf32, #tpu.memory_space<vmem>>, vector<1x1x96xf32>
    %225 = vector.shape_cast %224 : vector<1x1x96xf32> to vector<1x96xf32>
    %226 = vector.broadcast %225 : vector<1x96xf32> to vector<16x96xf32>
    %227 = arith.addf %223, %226 : vector<16x96xf32>
    %228 = vector.shape_cast %227 : vector<16x96xf32> to vector<2x8x96xf32>
    %229 = vector.extract_strided_slice %228 {offsets = [0, 0, 0], sizes = [2, 8, 8], strides = [1, 1, 1]} : vector<2x8x96xf32> to vector<2x8x8xf32>
    %230 = arith.truncf %229 : vector<2x8x8xf32> to vector<2x8x8xbf16>
    %231 = vector.extract_strided_slice %228 {offsets = [0, 0, 32], sizes = [2, 8, 8], strides = [1, 1, 1]} : vector<2x8x96xf32> to vector<2x8x8xf32>
    %232 = arith.truncf %231 : vector<2x8x8xf32> to vector<2x8x8xbf16>
    %233 = vector.extract_strided_slice %228 {offsets = [0, 0, 64], sizes = [2, 8, 8], strides = [1, 1, 1]} : vector<2x8x96xf32> to vector<2x8x8xf32>
    %234 = arith.truncf %233 : vector<2x8x8xf32> to vector<2x8x8xbf16>
    "tpu.trace_start"() <{level = 10 : i32, message = "bqd,bkd->bqk"}> : () -> ()
    %cst_92 = arith.constant dense<0.000000e+00> : vector<2x8x8xf32>
    %235 = tpu.matmul %230, %232, %cst_92 {dimension_numbers = #tpu.dot_dimension_numbers<[2], [2], [1], [1], [0, 0, 0, 1, 1, 1], [0], [0]>} : vector<2x8x8xbf16>, vector<2x8x8xbf16>, vector<2x8x8xf32> -> vector<2x8x8xf32>
    "tpu.trace_stop"() : () -> ()
    %cst_93 = arith.constant 0.353553385 : f32
    %236 = vector.broadcast %cst_93 : f32 to vector<2x8x8xf32>
    %237 = arith.mulf %235, %236 : vector<2x8x8xf32>
    %238 = vector.broadcast %0 : vector<2x1x8xf32> to vector<2x8x8xf32>
    %239 = arith.addf %237, %238 : vector<2x8x8xf32>
    %cst_94 = arith.constant dense<0xFF800000> : vector<2x8xf32>
    %240 = vector.multi_reduction <maximumf>, %239, %cst_94 [2] : vector<2x8x8xf32> to vector<2x8xf32>
    %241 = vector.shape_cast %240 : vector<2x8xf32> to vector<2x8x1xf32>
    %242 = vector.broadcast %241 : vector<2x8x1xf32> to vector<2x8x8xf32>
    %243 = arith.subf %239, %242 : vector<2x8x8xf32>
    %244 = math.exp %243 : vector<2x8x8xf32>
    %cst_95 = arith.constant dense<0.000000e+00> : vector<2x8xf32>
    %245 = vector.multi_reduction <add>, %244, %cst_95 [2] : vector<2x8x8xf32> to vector<2x8xf32>
    %246 = vector.shape_cast %245 : vector<2x8xf32> to vector<2x8x1xf32>
    %247 = tpu.reciprocal %246 {approx = true} : vector<2x8x1xf32> -> vector<2x8x1xf32>
    %248 = vector.broadcast %247 : vector<2x8x1xf32> to vector<2x8x8xf32>
    %249 = arith.mulf %244, %248 : vector<2x8x8xf32>
    %250 = arith.truncf %249 : vector<2x8x8xf32> to vector<2x8x8xbf16>
    "tpu.trace_start"() <{level = 10 : i32, message = "bqk,bkd->bqd"}> : () -> ()
    %cst_96 = arith.constant dense<0.000000e+00> : vector<2x8x8xf32>
    %251 = tpu.matmul %250, %234, %cst_96 {dimension_numbers = #tpu.dot_dimension_numbers<[2], [1], [1], [2], [0, 0, 0, 1, 1, 2], [0], [0]>} : vector<2x8x8xbf16>, vector<2x8x8xbf16>, vector<2x8x8xf32> -> vector<2x8x8xf32>
    "tpu.trace_stop"() : () -> ()
    %252 = vector.extract_strided_slice %228 {offsets = [0, 0, 8], sizes = [2, 8, 8], strides = [1, 1, 1]} : vector<2x8x96xf32> to vector<2x8x8xf32>
    %253 = arith.truncf %252 : vector<2x8x8xf32> to vector<2x8x8xbf16>
    %254 = vector.extract_strided_slice %228 {offsets = [0, 0, 40], sizes = [2, 8, 8], strides = [1, 1, 1]} : vector<2x8x96xf32> to vector<2x8x8xf32>
    %255 = arith.truncf %254 : vector<2x8x8xf32> to vector<2x8x8xbf16>
    %256 = vector.extract_strided_slice %228 {offsets = [0, 0, 72], sizes = [2, 8, 8], strides = [1, 1, 1]} : vector<2x8x96xf32> to vector<2x8x8xf32>
    %257 = arith.truncf %256 : vector<2x8x8xf32> to vector<2x8x8xbf16>
    "tpu.trace_start"() <{level = 10 : i32, message = "bqd,bkd->bqk"}> : () -> ()
    %cst_97 = arith.constant dense<0.000000e+00> : vector<2x8x8xf32>
    %258 = tpu.matmul %253, %255, %cst_97 {dimension_numbers = #tpu.dot_dimension_numbers<[2], [2], [1], [1], [0, 0, 0, 1, 1, 1], [0], [0]>} : vector<2x8x8xbf16>, vector<2x8x8xbf16>, vector<2x8x8xf32> -> vector<2x8x8xf32>
    "tpu.trace_stop"() : () -> ()
    %cst_98 = arith.constant 0.353553385 : f32
    %259 = vector.broadcast %cst_98 : f32 to vector<2x8x8xf32>
    %260 = arith.mulf %258, %259 : vector<2x8x8xf32>
    %261 = vector.broadcast %0 : vector<2x1x8xf32> to vector<2x8x8xf32>
    %262 = arith.addf %260, %261 : vector<2x8x8xf32>
    %cst_99 = arith.constant dense<0xFF800000> : vector<2x8xf32>
    %263 = vector.multi_reduction <maximumf>, %262, %cst_99 [2] : vector<2x8x8xf32> to vector<2x8xf32>
    %264 = vector.shape_cast %263 : vector<2x8xf32> to vector<2x8x1xf32>
    %265 = vector.broadcast %264 : vector<2x8x1xf32> to vector<2x8x8xf32>
    %266 = arith.subf %262, %265 : vector<2x8x8xf32>
    %267 = math.exp %266 : vector<2x8x8xf32>
    %cst_100 = arith.constant dense<0.000000e+00> : vector<2x8xf32>
    %268 = vector.multi_reduction <add>, %267, %cst_100 [2] : vector<2x8x8xf32> to vector<2x8xf32>
    %269 = vector.shape_cast %268 : vector<2x8xf32> to vector<2x8x1xf32>
    %270 = tpu.reciprocal %269 {approx = true} : vector<2x8x1xf32> -> vector<2x8x1xf32>
    %271 = vector.broadcast %270 : vector<2x8x1xf32> to vector<2x8x8xf32>
    %272 = arith.mulf %267, %271 : vector<2x8x8xf32>
    %273 = arith.truncf %272 : vector<2x8x8xf32> to vector<2x8x8xbf16>
    "tpu.trace_start"() <{level = 10 : i32, message = "bqk,bkd->bqd"}> : () -> ()
    %cst_101 = arith.constant dense<0.000000e+00> : vector<2x8x8xf32>
    %274 = tpu.matmul %273, %257, %cst_101 {dimension_numbers = #tpu.dot_dimension_numbers<[2], [1], [1], [2], [0, 0, 0, 1, 1, 2], [0], [0]>} : vector<2x8x8xbf16>, vector<2x8x8xbf16>, vector<2x8x8xf32> -> vector<2x8x8xf32>
    "tpu.trace_stop"() : () -> ()
    %275 = vector.extract_strided_slice %228 {offsets = [0, 0, 16], sizes = [2, 8, 8], strides = [1, 1, 1]} : vector<2x8x96xf32> to vector<2x8x8xf32>
    %276 = arith.truncf %275 : vector<2x8x8xf32> to vector<2x8x8xbf16>
    %277 = vector.extract_strided_slice %228 {offsets = [0, 0, 48], sizes = [2, 8, 8], strides = [1, 1, 1]} : vector<2x8x96xf32> to vector<2x8x8xf32>
    %278 = arith.truncf %277 : vector<2x8x8xf32> to vector<2x8x8xbf16>
    %279 = vector.extract_strided_slice %228 {offsets = [0, 0, 80], sizes = [2, 8, 8], strides = [1, 1, 1]} : vector<2x8x96xf32> to vector<2x8x8xf32>
    %280 = arith.truncf %279 : vector<2x8x8xf32> to vector<2x8x8xbf16>
    "tpu.trace_start"() <{level = 10 : i32, message = "bqd,bkd->bqk"}> : () -> ()
    %cst_102 = arith.constant dense<0.000000e+00> : vector<2x8x8xf32>
    %281 = tpu.matmul %276, %278, %cst_102 {dimension_numbers = #tpu.dot_dimension_numbers<[2], [2], [1], [1], [0, 0, 0, 1, 1, 1], [0], [0]>} : vector<2x8x8xbf16>, vector<2x8x8xbf16>, vector<2x8x8xf32> -> vector<2x8x8xf32>
    "tpu.trace_stop"() : () -> ()
    %cst_103 = arith.constant 0.353553385 : f32
    %282 = vector.broadcast %cst_103 : f32 to vector<2x8x8xf32>
    %283 = arith.mulf %281, %282 : vector<2x8x8xf32>
    %284 = vector.broadcast %0 : vector<2x1x8xf32> to vector<2x8x8xf32>
    %285 = arith.addf %283, %284 : vector<2x8x8xf32>
    %cst_104 = arith.constant dense<0xFF800000> : vector<2x8xf32>
    %286 = vector.multi_reduction <maximumf>, %285, %cst_104 [2] : vector<2x8x8xf32> to vector<2x8xf32>
    %287 = vector.shape_cast %286 : vector<2x8xf32> to vector<2x8x1xf32>
    %288 = vector.broadcast %287 : vector<2x8x1xf32> to vector<2x8x8xf32>
    %289 = arith.subf %285, %288 : vector<2x8x8xf32>
    %290 = math.exp %289 : vector<2x8x8xf32>
    %cst_105 = arith.constant dense<0.000000e+00> : vector<2x8xf32>
    %291 = vector.multi_reduction <add>, %290, %cst_105 [2] : vector<2x8x8xf32> to vector<2x8xf32>
    %292 = vector.shape_cast %291 : vector<2x8xf32> to vector<2x8x1xf32>
    %293 = tpu.reciprocal %292 {approx = true} : vector<2x8x1xf32> -> vector<2x8x1xf32>
    %294 = vector.broadcast %293 : vector<2x8x1xf32> to vector<2x8x8xf32>
    %295 = arith.mulf %290, %294 : vector<2x8x8xf32>
    %296 = arith.truncf %295 : vector<2x8x8xf32> to vector<2x8x8xbf16>
    "tpu.trace_start"() <{level = 10 : i32, message = "bqk,bkd->bqd"}> : () -> ()
    %cst_106 = arith.constant dense<0.000000e+00> : vector<2x8x8xf32>
    %297 = tpu.matmul %296, %280, %cst_106 {dimension_numbers = #tpu.dot_dimension_numbers<[2], [1], [1], [2], [0, 0, 0, 1, 1, 2], [0], [0]>} : vector<2x8x8xbf16>, vector<2x8x8xbf16>, vector<2x8x8xf32> -> vector<2x8x8xf32>
    "tpu.trace_stop"() : () -> ()
    %298 = vector.extract_strided_slice %228 {offsets = [0, 0, 24], sizes = [2, 8, 8], strides = [1, 1, 1]} : vector<2x8x96xf32> to vector<2x8x8xf32>
    %299 = arith.truncf %298 : vector<2x8x8xf32> to vector<2x8x8xbf16>
    %300 = vector.extract_strided_slice %228 {offsets = [0, 0, 56], sizes = [2, 8, 8], strides = [1, 1, 1]} : vector<2x8x96xf32> to vector<2x8x8xf32>
    %301 = arith.truncf %300 : vector<2x8x8xf32> to vector<2x8x8xbf16>
    %302 = vector.extract_strided_slice %228 {offsets = [0, 0, 88], sizes = [2, 8, 8], strides = [1, 1, 1]} : vector<2x8x96xf32> to vector<2x8x8xf32>
    %303 = arith.truncf %302 : vector<2x8x8xf32> to vector<2x8x8xbf16>
    "tpu.trace_start"() <{level = 10 : i32, message = "bqd,bkd->bqk"}> : () -> ()
    %cst_107 = arith.constant dense<0.000000e+00> : vector<2x8x8xf32>
    %304 = tpu.matmul %299, %301, %cst_107 {dimension_numbers = #tpu.dot_dimension_numbers<[2], [2], [1], [1], [0, 0, 0, 1, 1, 1], [0], [0]>} : vector<2x8x8xbf16>, vector<2x8x8xbf16>, vector<2x8x8xf32> -> vector<2x8x8xf32>
    "tpu.trace_stop"() : () -> ()
    %cst_108 = arith.constant 0.353553385 : f32
    %305 = vector.broadcast %cst_108 : f32 to vector<2x8x8xf32>
    %306 = arith.mulf %304, %305 : vector<2x8x8xf32>
    %307 = vector.broadcast %0 : vector<2x1x8xf32> to vector<2x8x8xf32>
    %308 = arith.addf %306, %307 : vector<2x8x8xf32>
    %cst_109 = arith.constant dense<0xFF800000> : vector<2x8xf32>
    %309 = vector.multi_reduction <maximumf>, %308, %cst_109 [2] : vector<2x8x8xf32> to vector<2x8xf32>
    %310 = vector.shape_cast %309 : vector<2x8xf32> to vector<2x8x1xf32>
    %311 = vector.broadcast %310 : vector<2x8x1xf32> to vector<2x8x8xf32>
    %312 = arith.subf %308, %311 : vector<2x8x8xf32>
    %313 = math.exp %312 : vector<2x8x8xf32>
    %cst_110 = arith.constant dense<0.000000e+00> : vector<2x8xf32>
    %314 = vector.multi_reduction <add>, %313, %cst_110 [2] : vector<2x8x8xf32> to vector<2x8xf32>
    %315 = vector.shape_cast %314 : vector<2x8xf32> to vector<2x8x1xf32>
    %316 = tpu.reciprocal %315 {approx = true} : vector<2x8x1xf32> -> vector<2x8x1xf32>
    %317 = vector.broadcast %316 : vector<2x8x1xf32> to vector<2x8x8xf32>
    %318 = arith.mulf %313, %317 : vector<2x8x8xf32>
    %319 = arith.truncf %318 : vector<2x8x8xf32> to vector<2x8x8xbf16>
    "tpu.trace_start"() <{level = 10 : i32, message = "bqk,bkd->bqd"}> : () -> ()
    %cst_111 = arith.constant dense<0.000000e+00> : vector<2x8x8xf32>
    %320 = tpu.matmul %319, %303, %cst_111 {dimension_numbers = #tpu.dot_dimension_numbers<[2], [1], [1], [2], [0, 0, 0, 1, 1, 2], [0], [0]>} : vector<2x8x8xbf16>, vector<2x8x8xbf16>, vector<2x8x8xf32> -> vector<2x8x8xf32>
    "tpu.trace_stop"() : () -> ()
    %321 = tpu.concatenate %251, %274, %297, %320 in 2 : vector<2x8x8xf32>, vector<2x8x8xf32>, vector<2x8x8xf32>, vector<2x8x8xf32> -> vector<2x8x32xf32>
    %322 = vector.shape_cast %321 : vector<2x8x32xf32> to vector<16x32xf32>
    %c1_112 = arith.constant 1 : index
    %c0_113 = arith.constant 0 : index
    %c0_114 = arith.constant 0 : index
    %323 = vector.load %arg6[%c1_112, %c0_113, %c0_114] : memref<2x32x32xbf16, #tpu.memory_space<vmem>>, vector<1x32x32xbf16>
    %324 = vector.shape_cast %323 : vector<1x32x32xbf16> to vector<32x32xbf16>
    %325 = arith.truncf %322 : vector<16x32xf32> to vector<16x32xbf16>
    %cst_115 = arith.constant dense<0.000000e+00> : vector<16x32xf32>
    %326 = tpu.matmul %325, %324, %cst_115 {dimension_numbers = #tpu.dot_dimension_numbers<[1], [0], [0], [1], [0, 0, 1, 1], [], []>} : vector<16x32xbf16>, vector<32x32xbf16>, vector<16x32xf32> -> vector<16x32xf32>
    %c1_116 = arith.constant 1 : index
    %c0_117 = arith.constant 0 : index
    %c0_118 = arith.constant 0 : index
    %327 = vector.load %arg7[%c1_116, %c0_117, %c0_118] : memref<2x1x32xf32, #tpu.memory_space<vmem>>, vector<1x1x32xf32>
    %328 = vector.shape_cast %327 : vector<1x1x32xf32> to vector<1x32xf32>
    %329 = vector.broadcast %328 : vector<1x32xf32> to vector<16x32xf32>
    %330 = arith.addf %326, %329 : vector<16x32xf32>
    %331 = arith.addf %330, %219 : vector<16x32xf32>
    %c1_119 = arith.constant 1 : index
    %c0_120 = arith.constant 0 : index
    %c0_121 = arith.constant 0 : index
    %332 = vector.load %arg8[%c1_119, %c0_120, %c0_121] : memref<2x1x32xf32, #tpu.memory_space<vmem>>, vector<1x1x32xf32>
    %333 = vector.shape_cast %332 : vector<1x1x32xf32> to vector<1x32xf32>
    %c1_122 = arith.constant 1 : index
    %c0_123 = arith.constant 0 : index
    %c0_124 = arith.constant 0 : index
    %334 = vector.load %arg9[%c1_122, %c0_123, %c0_124] : memref<2x1x32xf32, #tpu.memory_space<vmem>>, vector<1x1x32xf32>
    %335 = vector.shape_cast %334 : vector<1x1x32xf32> to vector<1x32xf32>
    %cst_125 = arith.constant dense<0.000000e+00> : vector<16xf32>
    %336 = vector.multi_reduction <add>, %331, %cst_125 [1] : vector<16x32xf32> to vector<16xf32>
    %337 = vector.shape_cast %336 : vector<16xf32> to vector<16x1xf32>
    %cst_126 = arith.constant 3.200000e+01 : f32
    %338 = vector.broadcast %cst_126 : f32 to vector<16x1xf32>
    %339 = arith.divf %337, %338 : vector<16x1xf32>
    %340 = arith.mulf %331, %331 : vector<16x32xf32>
    %cst_127 = arith.constant dense<0.000000e+00> : vector<16xf32>
    %341 = vector.multi_reduction <add>, %340, %cst_127 [1] : vector<16x32xf32> to vector<16xf32>
    %342 = vector.shape_cast %341 : vector<16xf32> to vector<16x1xf32>
    %cst_128 = arith.constant 3.200000e+01 : f32
    %343 = vector.broadcast %cst_128 : f32 to vector<16x1xf32>
    %344 = arith.divf %342, %343 : vector<16x1xf32>
    %345 = arith.mulf %339, %339 : vector<16x1xf32>
    %346 = arith.subf %344, %345 : vector<16x1xf32>
    %347 = vector.broadcast %339 : vector<16x1xf32> to vector<16x32xf32>
    %348 = arith.subf %331, %347 : vector<16x32xf32>
    %cst_129 = arith.constant 9.99999996E-13 : f32
    %349 = vector.broadcast %cst_129 : f32 to vector<16x1xf32>
    %350 = arith.addf %346, %349 : vector<16x1xf32>
    %351 = math.rsqrt %350 : vector<16x1xf32>
    %352 = vector.broadcast %351 : vector<16x1xf32> to vector<16x32xf32>
    %353 = arith.mulf %348, %352 : vector<16x32xf32>
    %354 = vector.broadcast %333 : vector<1x32xf32> to vector<16x32xf32>
    %355 = arith.mulf %353, %354 : vector<16x32xf32>
    %356 = vector.broadcast %335 : vector<1x32xf32> to vector<16x32xf32>
    %357 = arith.addf %355, %356 : vector<16x32xf32>
    %c1_130 = arith.constant 1 : index
    %c0_131 = arith.constant 0 : index
    %c0_132 = arith.constant 0 : index
    %358 = vector.load %arg10[%c1_130, %c0_131, %c0_132] : memref<2x32x64xbf16, #tpu.memory_space<vmem>>, vector<1x32x64xbf16>
    %359 = vector.shape_cast %358 : vector<1x32x64xbf16> to vector<32x64xbf16>
    %360 = arith.truncf %357 : vector<16x32xf32> to vector<16x32xbf16>
    %cst_133 = arith.constant dense<0.000000e+00> : vector<16x64xf32>
    %361 = tpu.matmul %360, %359, %cst_133 {dimension_numbers = #tpu.dot_dimension_numbers<[1], [0], [0], [1], [0, 0, 1, 1], [], []>} : vector<16x32xbf16>, vector<32x64xbf16>, vector<16x64xf32> -> vector<16x64xf32>
    %c1_134 = arith.constant 1 : index
    %c0_135 = arith.constant 0 : index
    %c0_136 = arith.constant 0 : index
    %362 = vector.load %arg11[%c1_134, %c0_135, %c0_136] : memref<2x1x64xf32, #tpu.memory_space<vmem>>, vector<1x1x64xf32>
    %363 = vector.shape_cast %362 : vector<1x1x64xf32> to vector<1x64xf32>
    %364 = vector.broadcast %363 : vector<1x64xf32> to vector<16x64xf32>
    %365 = arith.addf %361, %364 : vector<16x64xf32>
    %366 = arith.mulf %365, %365 : vector<16x64xf32>
    %367 = arith.mulf %365, %366 : vector<16x64xf32>
    %cst_137 = arith.constant 4.471500e-02 : f32
    %368 = vector.broadcast %cst_137 : f32 to vector<16x64xf32>
    %369 = arith.mulf %368, %367 : vector<16x64xf32>
    %370 = arith.addf %365, %369 : vector<16x64xf32>
    %cst_138 = arith.constant 0.797884583 : f32
    %371 = vector.broadcast %cst_138 : f32 to vector<16x64xf32>
    %372 = arith.mulf %371, %370 : vector<16x64xf32>
    %373 = math.tanh %372 : vector<16x64xf32>
    %cst_139 = arith.constant 1.000000e+00 : f32
    %374 = vector.broadcast %cst_139 : f32 to vector<16x64xf32>
    %375 = arith.addf %374, %373 : vector<16x64xf32>
    %cst_140 = arith.constant 5.000000e-01 : f32
    %376 = vector.broadcast %cst_140 : f32 to vector<16x64xf32>
    %377 = arith.mulf %376, %375 : vector<16x64xf32>
    %378 = arith.mulf %365, %377 : vector<16x64xf32>
    %c1_141 = arith.constant 1 : index
    %c0_142 = arith.constant 0 : index
    %c0_143 = arith.constant 0 : index
    %379 = vector.load %arg12[%c1_141, %c0_142, %c0_143] : memref<2x64x32xbf16, #tpu.memory_space<vmem>>, vector<1x64x32xbf16>
    %380 = vector.shape_cast %379 : vector<1x64x32xbf16> to vector<64x32xbf16>
    %381 = arith.truncf %378 : vector<16x64xf32> to vector<16x64xbf16>
    %cst_144 = arith.constant dense<0.000000e+00> : vector<16x32xf32>
    %382 = tpu.matmul %381, %380, %cst_144 {dimension_numbers = #tpu.dot_dimension_numbers<[1], [0], [0], [1], [0, 0, 1, 1], [], []>} : vector<16x64xbf16>, vector<64x32xbf16>, vector<16x32xf32> -> vector<16x32xf32>
    %c1_145 = arith.constant 1 : index
    %c0_146 = arith.constant 0 : index
    %c0_147 = arith.constant 0 : index
    %383 = vector.load %arg13[%c1_145, %c0_146, %c0_147] : memref<2x1x32xf32, #tpu.memory_space<vmem>>, vector<1x1x32xf32>
    %384 = vector.shape_cast %383 : vector<1x1x32xf32> to vector<1x32xf32>
    %385 = vector.broadcast %384 : vector<1x32xf32> to vector<16x32xf32>
    %386 = arith.addf %382, %385 : vector<16x32xf32>
    %387 = arith.addf %386, %357 : vector<16x32xf32>
    %c1_148 = arith.constant 1 : index
    %c0_149 = arith.constant 0 : index
    %c0_150 = arith.constant 0 : index
    %388 = vector.load %arg14[%c1_148, %c0_149, %c0_150] : memref<2x1x32xf32, #tpu.memory_space<vmem>>, vector<1x1x32xf32>
    %389 = vector.shape_cast %388 : vector<1x1x32xf32> to vector<1x32xf32>
    %c1_151 = arith.constant 1 : index
    %c0_152 = arith.constant 0 : index
    %c0_153 = arith.constant 0 : index
    %390 = vector.load %arg15[%c1_151, %c0_152, %c0_153] : memref<2x1x32xf32, #tpu.memory_space<vmem>>, vector<1x1x32xf32>
    %391 = vector.shape_cast %390 : vector<1x1x32xf32> to vector<1x32xf32>
    %cst_154 = arith.constant dense<0.000000e+00> : vector<16xf32>
    %392 = vector.multi_reduction <add>, %387, %cst_154 [1] : vector<16x32xf32> to vector<16xf32>
    %393 = vector.shape_cast %392 : vector<16xf32> to vector<16x1xf32>
    %cst_155 = arith.constant 3.200000e+01 : f32
    %394 = vector.broadcast %cst_155 : f32 to vector<16x1xf32>
    %395 = arith.divf %393, %394 : vector<16x1xf32>
    %396 = arith.mulf %387, %387 : vector<16x32xf32>
    %cst_156 = arith.constant dense<0.000000e+00> : vector<16xf32>
    %397 = vector.multi_reduction <add>, %396, %cst_156 [1] : vector<16x32xf32> to vector<16xf32>
    %398 = vector.shape_cast %397 : vector<16xf32> to vector<16x1xf32>
    %cst_157 = arith.constant 3.200000e+01 : f32
    %399 = vector.broadcast %cst_157 : f32 to vector<16x1xf32>
    %400 = arith.divf %398, %399 : vector<16x1xf32>
    %401 = arith.mulf %395, %395 : vector<16x1xf32>
    %402 = arith.subf %400, %401 : vector<16x1xf32>
    %403 = vector.broadcast %395 : vector<16x1xf32> to vector<16x32xf32>
    %404 = arith.subf %387, %403 : vector<16x32xf32>
    %cst_158 = arith.constant 9.99999996E-13 : f32
    %405 = vector.broadcast %cst_158 : f32 to vector<16x1xf32>
    %406 = arith.addf %402, %405 : vector<16x1xf32>
    %407 = math.rsqrt %406 : vector<16x1xf32>
    %408 = vector.broadcast %407 : vector<16x1xf32> to vector<16x32xf32>
    %409 = arith.mulf %404, %408 : vector<16x32xf32>
    %410 = vector.broadcast %389 : vector<1x32xf32> to vector<16x32xf32>
    %411 = arith.mulf %409, %410 : vector<16x32xf32>
    %412 = vector.broadcast %391 : vector<1x32xf32> to vector<16x32xf32>
    %413 = arith.addf %411, %412 : vector<16x32xf32>
    %414 = vector.shape_cast %413 : vector<16x32xf32> to vector<2x8x32xf32>
    %415 = vector.extract_strided_slice %414 {offsets = [0, 0, 0], sizes = [2, 1, 32], strides = [1, 1, 1]} : vector<2x8x32xf32> to vector<2x1x32xf32>
    %416 = vector.shape_cast %415 : vector<2x1x32xf32> to vector<2x32xf32>
    %c0_159 = arith.constant 0 : index
    %c0_160 = arith.constant 0 : index
    %417 = vector.load %arg16[%c0_159, %c0_160] : memref<32x32xbf16, #tpu.memory_space<vmem>>, vector<32x32xbf16>
    %418 = arith.truncf %416 : vector<2x32xf32> to vector<2x32xbf16>
    %cst_161 = arith.constant dense<0.000000e+00> : vector<2x32xf32>
    %419 = tpu.matmul %418, %417, %cst_161 {dimension_numbers = #tpu.dot_dimension_numbers<[1], [0], [0], [1], [0, 0, 1, 1], [], []>} : vector<2x32xbf16>, vector<32x32xbf16>, vector<2x32xf32> -> vector<2x32xf32>
    %c0_162 = arith.constant 0 : index
    %c0_163 = arith.constant 0 : index
    %420 = vector.load %arg17[%c0_162, %c0_163] : memref<1x32xf32, #tpu.memory_space<vmem>>, vector<1x32xf32>
    %421 = vector.broadcast %420 : vector<1x32xf32> to vector<2x32xf32>
    %422 = arith.addf %419, %421 : vector<2x32xf32>
    %423 = math.tanh %422 : vector<2x32xf32>
    %c0_164 = arith.constant 0 : index
    %c0_165 = arith.constant 0 : index
    %424 = vector.load %arg18[%c0_164, %c0_165] : memref<32x128xbf16, #tpu.memory_space<vmem>>, vector<32x128xbf16>
    %425 = arith.truncf %423 : vector<2x32xf32> to vector<2x32xbf16>
    %cst_166 = arith.constant dense<0.000000e+00> : vector<2x128xf32>
    %426 = tpu.matmul %425, %424, %cst_166 {dimension_numbers = #tpu.dot_dimension_numbers<[1], [0], [0], [1], [0, 0, 1, 1], [], []>} : vector<2x32xbf16>, vector<32x128xbf16>, vector<2x128xf32> -> vector<2x128xf32>
    %c0_167 = arith.constant 0 : index
    %c0_168 = arith.constant 0 : index
    %427 = vector.load %arg19[%c0_167, %c0_168] : memref<1x128xf32, #tpu.memory_space<vmem>>, vector<1x128xf32>
    %428 = vector.broadcast %427 : vector<1x128xf32> to vector<2x128xf32>
    %429 = arith.addf %426, %428 : vector<2x128xf32>
    %c0_169 = arith.constant 0 : index
    %c0_170 = arith.constant 0 : index
    %430 = vector.load %arg20[%c0_169, %c0_170] : memref<2x128xf32, #tpu.memory_space<vmem>>, vector<2x128xf32>
    tpu.vector_store %arg20[%c0_169, %c0_170], %429 {strides = array<i32>} : memref<2x128xf32, #tpu.memory_space<vmem>>, vector<2x128xf32>,
    return
  }
}

</mosaic_0001>

<bundles_post_ra>
// kernel: bert_sentiment_forward.1
= control target key start
LH: loop header
LB: loop body
LE: loop exit
PB: predicated region body
PF: predicated region fallthrough
CT: control target
= control target key end

     0   :  { %s2889_s0 = inlined_call_operand.vmem [shape: f32[16,32], index: 0, kind: input, shape index: {}]   ;;  %s2890_s1 = inlined_call_operand.vmem [shape: f32[2,1,8], index: 1, kind: input, shape index: {}]   ;;  %s2891_s2 = inlined_call_operand.vmem [shape: f32[1,32], index: 2, kind: input, shape index: {}]   ;;  %s2892_s3 = inlined_call_operand.vmem [shape: f32[1,32], index: 3, kind: input, shape index: {}]   ;;  %s2893_s4 = inlined_call_operand.vmem [shape: bf16[2,32,96], index: 4, kind: input, shape index: {}]   ;;  %s2894_s5 = inlined_call_operand.vmem [shape: f32[2,1,96], index: 5, kind: input, shape index: {}]   ;;  %s2895_s6 = inlined_call_operand.vmem [shape: bf16[2,32,32], index: 6, kind: input, shape index: {}]   ;;  %s2896_s7 = inlined_call_operand.vmem [shape: f32[2,1,32], index: 7, kind: input, shape index: {}]   ;;  %s2897_s8 = inlined_call_operand.vmem [shape: f32[2,1,32], index: 8, kind: input, shape index: {}]   ;;  %s2898_s9 = inlined_call_operand.vmem [shape: f32[2,1,32], index: 9, kind: input, shape index: {}]   ;;  %s2899_s10 = inlined_call_operand.vmem [shape: bf16[2,32,64], index: 10, kind: input, shape index: {}]   ;;  %s2900_s11 = inlined_call_operand.vmem [shape: f32[2,1,64], index: 11, kind: input, shape index: {}]   ;;  %s2901_s12 = inlined_call_operand.vmem [shape: bf16[2,64,32], index: 12, kind: input, shape index: {}]   ;;  %s2902_s13 = inlined_call_operand.vmem [shape: f32[2,1,32], index: 13, kind: input, shape index: {}]   ;;  %s2903_s14 = inlined_call_operand.vmem [shape: f32[2,1,32], index: 14, kind: input, shape index: {}]   ;;  %s2904_s15 = inlined_call_operand.vmem [shape: f32[2,1,32], index: 15, kind: input, shape index: {}]   ;;  %s2905_s16 = inlined_call_operand.vmem [shape: bf16[32,32], index: 16, kind: input, shape index: {}]   ;;  %s2906_s17 = inlined_call_operand.vmem [shape: f32[1,32], index: 17, kind: input, shape index: {}]   ;;  %s2907_s18 = inlined_call_operand.vmem [shape: bf16[32,128], index: 18, kind: input, shape index: {}]   ;;  %s2908_s19 = inlined_call_operand.vmem [shape: f32[1,128], index: 19, kind: input, shape index: {}]   ;;  %s2909_s20 = inlined_call_operand.hbm [shape: f32[2,128], index: 20, kind: output, shape index: {}]  }
   0x1   :  { %2932 = sst [smem:[#allocation5_spill]] %s2889_s0 }
   0x2   :  { %2933 = sst [smem:[#allocation6_spill]] %s2890_s1 }
   0x3   :  { %2934 = sst [smem:[#allocation7_spill]] %s2891_s2 }
   0x4   :  { %2935 = sst [smem:[#allocation8_spill]] %s2892_s3 }
   0x5   :  { %2936 = sst [smem:[#allocation9_spill]] %s2893_s4 }
   0x6   :  { %s2937_s23 = sld [smem:[#allocation5_spill]]  ;;  %vm73_vm0 = vcmask 261120  }
   0xc   :  { %v69_v0 = vld [vmem:[%s2937_s23] sm:$0xff]  ;;  %v2388_v1 = vld [vmem:[%s2937_s23 + $0x8] sm:$0xff] }
   0xd   :  { %v74_v2 = vsel %vm73_vm0, %v69_v0, 0.0  ;;  %v89_v3 = vmul.f32 %v69_v0, %v69_v0  ;;  %v77_v5 = vsel %vm73_vm0, %v2388_v1, 0.0  ;;  %v90_v6 = vmul.f32 %v2388_v1, %v2388_v1 }
   0xe   :  { %75 = vadd.xlane.f32.xlu0 %v74_v2 }
   0xf   :  { %v91_v4 = vsel %vm73_vm0, %v89_v3, 0.0 }
  0x10   :  { %92 = vadd.xlane.f32.xlu1 %v91_v4 }
  0x11   :  { %25 = vsyncpa [#allocation3], 0  ;;  %v94_v7 = vsel %vm73_vm0, %v90_v6, 0.0  ;;  %v2261_v8 = vmov 32.0   ;;  %s2938_s26 = sld [smem:[#allocation9_spill]]  ;;  %s2262_s24 = smov 88  }
  0x12   :  { %2137 = vrcp.f32 %v2261_v8  ;;  %s2939_s30 = sld [smem:[#allocation7_spill]]  ;;  %v2117_v56 = vld [vmem:[%s2894_s5] ss:$0 sm:$0xff]  ;;  %s2263_s2 = smov 96   ;;  %vm184_vm8 = vcmask 64512   ;;  %vm267_vm9 = vcmask 1043456  }
  0x13   :  { %s2940_s1 = sld [smem:[#allocation8_spill]]  ;;  %s2928_s25 = smov 80   ;;  %vm679_vm10 = vcmask 130048   ;;  %vm682_vm11 = vcmask 195584  }
  0x14   :  { %s2930_s3 = smov 112   ;;  %s2926_s27 = smov 72  }
  0x15   :  { %s2267_s28 = smov 120   ;;  %s2924_s4 = smov 104  }
  0x16   :  { %78 = vadd.xlane.f32.xlu0 %v77_v5  ;;  %s2941_s0 = sld [smem:[#allocation6_spill]]  ;;  %s2920_s22 = smov 64  }
  0x17   :  { %v2046_v18 = vld [vmem:[%s2938_s26 + $0x8] sm:$0xff]  ;;  %v2045_v21 = vld [vmem:[%s2938_s26] sm:$0xff]  ;;  %s2917_s23 = smov 56   ;;  %s2915_s29 = smov 48  }
  0x18   :  { %95 = vadd.xlane.f32.xlu1 %v94_v7  ;;  %v2138_v9 = vpop.eup %2137  ;;  %169 = vmatpush.bf16.msra.mxu0 %v2046_v18  ;;  %v2115_v45 = vld [vmem:[%s2939_s30] ss:$0 sm:$0xff]  ;;  %s2913_s30 = smov 40   ;;  %s2919_s21 = smov 8  }
  0x19   :  { %v81_v10 = vmul.f32 32.0, %v2138_v9  ;;  %vm85_vm1 = vweird.f32 %v2138_v9  ;;  %v2116_v51 = vld [vmem:[%s2940_s1] ss:$0 sm:$0xff]  ;;  %s2923_s1 = smov 16  }
  0x1b   :  { %v82_v11 = vsub.f32 1.0, %v81_v10 }
  0x1c   :  { %170 = vmatpush.bf16.msra.mxu0 %v2045_v21 }
  0x1d   :  { %v83_v12 = vmul.f32 %v2138_v9, %v82_v11 }
  0x1f   :  { %v84_v13 = vadd.f32 %v2138_v9, %v83_v12 }
  0x21   :  { %v2397_v14 = vsel %vm85_vm1, %v2138_v9, %v84_v13 }
  0x81   :  { %v76_v15 = vpop.xlane.xlu0 %75 }
  0x82   :  { %v87_v16 = vmul.f32 %v2397_v14, %v76_v15 }
  0x83   :  { %v93_v17 = vpop.xlane.xlu1 %92 }
  0x84   :  { %v99_v19 = vmul.f32 %v87_v16, %v87_v16  ;;  %v97_v20 = vmul.f32 %v93_v17, %v2397_v14  ;;  %v103_v42 = vsub.f32 %v69_v0, %v87_v16 }
  0x86   :  { %v101_v22 = vsub.f32 %v97_v20, %v99_v19 }
  0x88   :  { %v105_v23 = vadd.f32 1e-12, %v101_v22 }
  0x89   :  { %v79_v24 = vpop.xlane.xlu0 %78 }
  0x8a   :  { %2139 = vrsqrt.f32 %v105_v23  ;;  %v88_v25 = vmul.f32 %v2397_v14, %v79_v24  ;;  %vm113_vm3 = vweird.f32 %v105_v23 }
  0x8b   :  { %v96_v26 = vpop.xlane.xlu1 %95 }
  0x8c   :  { %v100_v27 = vmul.f32 %v88_v25, %v88_v25  ;;  %v98_v28 = vmul.f32 %v96_v26, %v2397_v14  ;;  %v104_v47 = vsub.f32 %v2388_v1, %v88_v25  ;;  %v2477_v26 = vld [vmem:[%s2941_s0] ss:$0 sm:$0xff] }
  0x8e   :  { %v102_v29 = vsub.f32 %v98_v28, %v100_v27 }
  0x90   :  { %v2140_v30 = vpop.eup %2139  ;;  %v106_v31 = vadd.f32 1e-12, %v102_v29 }
  0x91   :  { %v108_v32 = vmul.f32 %v2140_v30, %v105_v23  ;;  %vm114_vm2 = vweird.f32 %v2140_v30 }
  0x92   :  { %2141 = vrsqrt.f32 %v106_v31  ;;  %vm115_vm4 = vmor %vm113_vm3, %vm114_vm2  ;;  %vm123_vm6 = vweird.f32 %v106_v31  ;;  %vm878_vm3 = vcmask 523264  }
  0x93   :  { %v109_v33 = vmul.f32 %v2140_v30, %v108_v32  ;;  %v2484_v32 = vld [vmem:[%s2941_s0 + $0x1] ss:$0 sm:$0xff] }
  0x95   :  { %v110_v34 = vmul.f32 0.5, %v109_v33 }
  0x97   :  { %v111_v35 = vsub.f32 1.5, %v110_v34 }
  0x98   :  { %v2142_v36 = vpop.eup %2141 }
  0x99   :  { %v112_v37 = vmul.f32 %v2140_v30, %v111_v35  ;;  %v118_v38 = vmul.f32 %v2142_v36, %v106_v31  ;;  %vm124_vm5 = vweird.f32 %v2142_v36 }
  0x9a   :  { %vm125_vm7 = vmor %vm123_vm6, %vm124_vm5 }
  0x9b   :  { %v119_v39 = vmul.f32 %v2142_v36, %v118_v38  ;;  %v116_v40 = vsel %vm115_vm4, %v2140_v30, %v112_v37 }
  0x9c   :  { %v127_v44 = vmul.f32 %v116_v40, %v103_v42 }
  0x9d   :  { %v120_v41 = vmul.f32 0.5, %v119_v39 }
  0x9e   :  { %v132_v50 = vmul.f32 %v2115_v45, %v127_v44 }
  0x9f   :  { %v121_v43 = vsub.f32 1.5, %v120_v41 }
  0xa0   :  { %v2416_v53 = vadd.f32 %v2116_v51, %v132_v50 }
  0xa1   :  { %v122_v46 = vmul.f32 %v2142_v36, %v121_v43 }
  0xa3   :  { %v126_v48 = vsel %vm125_vm7, %v2142_v36, %v122_v46 }
  0xa4   :  { %v128_v49 = vmul.f32 %v126_v48, %v104_v47 }
  0xa6   :  { %v133_v52 = vmul.f32 %v2115_v45, %v128_v49 }
  0xa8   :  { %v2418_v54 = vadd.f32 %v2116_v51, %v133_v52 }
  0xaa   :  { %v143_v55 = vpack.c.bf16 %v2418_v54, %v2416_v53 }
  0xac   :  { %1887 = vmatmul.msk.bf16.vlgmr.msra.gmra.mxu0 %vm73_vm0, %v143_v55 }
 0x129   :  { %v172_v57 = vpop.f32.mrf.mxu0 }
 0x12a   :  { %v173_v58 = vadd.f32 %v2117_v56, %v172_v57 }
 0x12c   :  { %v177_v59 = vpack.c.bf16 %v173_v58, %v173_v58 }
 0x12e   :  { %v180_v60 = vunpack.c.l.b16 %v177_v59 }
 0x130   :  { %v2426_v61 = vpack.c.b16 %v180_v60, %v180_v60 }
 0x131   :  { %v174_v62 = vpop.f32.mrf.mxu0 }
 0x132   :  { %v175_v63 = vadd.f32 %v2117_v56, %v174_v62  ;;  %307 = vrot.lane.b32.xlu0 %v2426_v61, %s2262_s24  ;;  %182 = vrot.lane.b32.xlu2 %v2426_v61, %s2263_s2 }
 0x134   :  { %v178_v0 = vpack.c.bf16 %v175_v63, %v175_v63 }
 0x136   :  { %v205_v1 = vunpack.c.l.b16 %v178_v0 }
 0x138   :  { %v2432_v2 = vpack.c.b16 %v205_v1, %v205_v1 }
 0x13a   :  { %330 = vrot.lane.b32.xlu1 %v2432_v2, %s2262_s24  ;;  %446 = vrot.lane.b32.xlu0 %v2432_v2, %s2928_s25 }
 0x13b   :  { %207 = vrot.lane.b32.xlu2 %v2432_v2, %s2263_s2 }
 0x142   :  { %444 = vrot.lane.b32.xlu1 %v2432_v2, %s2930_s3  ;;  %539 = vrot.lane.b32.xlu0 %v2426_v61, %s2926_s27 }
 0x143   :  { %305 = vrot.lane.b32.xlu2 %v2426_v61, %s2267_s28 }
 0x14a   :  { %537 = vrot.lane.b32.xlu1 %v2426_v61, %s2924_s4  ;;  %560 = vrot.lane.b32.xlu0 %v2432_v2, %s2924_s4 }
 0x14b   :  { %328 = vrot.lane.b32.xlu2 %v2432_v2, %s2267_s28 }
 0x153   :  { %423 = vrot.lane.b32.xlu2 %v2426_v61, %s2928_s25 }
 0x15b   :  { %421 = vrot.lane.b32.xlu2 %v2426_v61, %s2930_s3  ;;  %s2943_s3 = smov 80  }
 0x163   :  { %562 = vrot.lane.b32.xlu2 %v2432_v2, %s2926_s27  ;;  %s2944_s27 = smov 72  }
 0x18c   :  { %v183_v3 = vpop.permute.xlu2 %182 }
 0x18d   :  { %v189_v4 = vsel %vm184_vm8, %v183_v3, 0 }
 0x18e   :  { %198 = vmatpush.bf16.xpose.msra.mxu1 %v189_v4 }
 0x195   :  { %v208_v5 = vpop.permute.xlu2 %207  ;;  %1888 = vmatmul.msk.bf16.vlgmr.msra.gmra.mxu1 %vm184_vm8, %v177_v59 }
 0x196   :  { %v213_v6 = vsel %vm184_vm8, %v208_v5, 0 }
 0x197   :  { %222 = vmatpush.bf16.xpose.msra.mxu2 %v213_v6 }
 0x19d   :  { %v306_v7 = vpop.permute.xlu2 %305 }
 0x19e   :  { %1889 = vmatmul.msk.bf16.vlgmr.msra.gmra.mxu2 %vm184_vm8, %v178_v0 }
 0x1a4   :  { %v308_v8 = vpop.permute.xlu0 %307 }
 0x1a5   :  { %v329_v9 = vpop.permute.xlu2 %328  ;;  %v313_v10 = vsel %vm184_vm8, %v308_v8, 0 }
 0x1a6   :  { %322 = vmatpush.bf16.xpose.msrb.mxu0 %v313_v10 }
 0x1ac   :  { %v331_v11 = vpop.permute.xlu1 %330  ;;  %v447_v12 = vpop.permute.xlu0 %446 }
 0x1ad   :  { %v452_v13 = vsel %vm184_vm8, %v447_v12, 0  ;;  %v424_v15 = vpop.permute.xlu2 %423  ;;  %1892 = vmatmul.msk.bf16.vlgmr.msrb.gmra.mxu0 %vm184_vm8, %v306_v7  ;;  %v336_v16 = vsel %vm184_vm8, %v331_v11, 0 }
 0x1ae   :  { %v429_v17 = vsel %vm184_vm8, %v424_v15, 0  ;;  %345 = vmatpush.bf16.xpose.msrb.mxu1 %v336_v16 }
 0x1af   :  { %438 = vmatpush.bf16.xpose.msra.mxu0 %v429_v17 }
 0x1b4   :  { %v540_v18 = vpop.permute.xlu0 %539  ;;  %v445_v23 = vpop.permute.xlu1 %444 }
 0x1b5   :  { %v545_v19 = vsel %vm184_vm8, %v540_v18, 0  ;;  %v422_v20 = vpop.permute.xlu2 %421  ;;  %1893 = vmatmul.msk.bf16.vlgmr.msrb.gmra.mxu1 %vm184_vm8, %v329_v9 }
 0x1b6   :  { %461 = vmatpush.bf16.xpose.msra.mxu1 %v452_v13 }
 0x1b7   :  { %554 = vmatpush.bf16.xpose.msrb.mxu0 %v545_v19 }
 0x1bc   :  { %v538_v24 = vpop.permute.xlu1 %537  ;;  %v561_v25 = vpop.permute.xlu0 %560 }
 0x1bd   :  { %v563_v21 = vpop.permute.xlu2 %562  ;;  %1896 = vmatmul.msk.bf16.vlgmr.msra.gmra.mxu0 %vm184_vm8, %v422_v20 }
 0x1be   :  { %v568_v22 = vsel %vm184_vm8, %v563_v21, 0 }
 0x1bf   :  { %577 = vmatpush.bf16.xpose.msrb.mxu1 %v568_v22 }
 0x1c5   :  { %1897 = vmatmul.msk.bf16.vlgmr.msra.gmra.mxu1 %vm184_vm8, %v445_v23 }
 0x1cd   :  { %1900 = vmatmul.msk.bf16.vlgmr.msrb.gmra.mxu0 %vm184_vm8, %v538_v24 }
 0x1d5   :  { %1901 = vmatmul.msk.bf16.vlgmr.msrb.gmra.mxu1 %vm184_vm8, %v561_v25 }
 0x212   :  { %v200_v27 = vpop.f32.mrf.mxu1 }
 0x213   :  { %v228_v28 = vmul.f32 0.35355338, %v200_v27 }
 0x215   :  { %v236_v29 = vadd.f32 %v2477_v26, %v228_v28 }
 0x217   :  { %v238_v30 = vsel %vm184_vm8, %v236_v29, -inf }
 0x218   :  { %239 = vmax.xlane.f32.xlu2 %v238_v30 }
 0x21a   :  { %v202_v31 = vpop.f32.mrf.mxu1 }
 0x221   :  { %v224_v33 = vpop.f32.mrf.mxu2 }
 0x222   :  { %v229_v34 = vmul.f32 0.35355338, %v224_v33 }
 0x224   :  { %v237_v35 = vadd.f32 %v2484_v32, %v229_v34 }
 0x226   :  { %v241_v36 = vsel %vm184_vm8, %v237_v35, -inf }
 0x227   :  { %242 = vmax.xlane.f32.xlu1 %v241_v36 }
 0x229   :  { %v226_v37 = vpop.f32.mrf.mxu2 }
 0x22a   :  { %v324_v38 = vpop.f32.mrf.mxu0 }
 0x22b   :  { %v351_v39 = vmul.f32 0.35355338, %v324_v38 }
 0x22d   :  { %v353_v40 = vadd.f32 %v2477_v26, %v351_v39 }
 0x22f   :  { %v355_v41 = vsel %vm184_vm8, %v353_v40, -inf }
 0x230   :  { %356 = vmax.xlane.f32.xlu0 %v355_v41  ;;  %284 = vrot.lane.b32.xlu2 %v2432_v2, %s2920_s22 }
 0x232   :  { %v326_v42 = vpop.f32.mrf.mxu0  ;;  %v347_v43 = vpop.f32.mrf.mxu1 }
 0x233   :  { %v352_v52 = vmul.f32 0.35355338, %v347_v43 }
 0x235   :  { %v354_v56 = vadd.f32 %v2484_v32, %v352_v52 }
 0x237   :  { %v358_v58 = vsel %vm184_vm8, %v354_v56, -inf }
 0x238   :  { %400 = vrot.lane.b32.xlu2 %v2432_v2, %s2917_s23 }
 0x23a   :  { %v349_v44 = vpop.f32.mrf.mxu1  ;;  %v440_v45 = vpop.f32.mrf.mxu0 }
 0x23b   :  { %v467_v59 = vmul.f32 0.35355338, %v440_v45 }
 0x23d   :  { %v469_v63 = vadd.f32 %v2477_v26, %v467_v59 }
 0x23f   :  { %v471_v1 = vsel %vm184_vm8, %v469_v63, -inf }
 0x240   :  { %262 = vrot.lane.b32.xlu1 %v2426_v61, %s2920_s22  ;;  %s2951_s22 = smov 16  }
 0x242   :  { %v442_v46 = vpop.f32.mrf.mxu0  ;;  %v463_v47 = vpop.f32.mrf.mxu1 }
 0x243   :  { %v468_v62 = vmul.f32 0.35355338, %v463_v47 }
 0x244   :  { %379 = vrot.lane.b32.xlu0 %v2426_v61, %s2917_s23  ;;  %s2952_s23 = smov 24  }
 0x245   :  { %v470_v3 = vadd.f32 %v2484_v32, %v468_v62 }
 0x247   :  { %v474_v5 = vsel %vm184_vm8, %v470_v3, -inf }
 0x24a   :  { %v465_v48 = vpop.f32.mrf.mxu1  ;;  %v556_v49 = vpop.f32.mrf.mxu0 }
 0x24b   :  { %v583_v4 = vmul.f32 0.35355338, %v556_v49 }
 0x24d   :  { %v585_v6 = vadd.f32 %v2477_v26, %v583_v4 }
 0x24f   :  { %v587_v7 = vsel %vm184_vm8, %v585_v6, -inf }
 0x252   :  { %v558_v50 = vpop.f32.mrf.mxu0  ;;  %v579_v51 = vpop.f32.mrf.mxu1 }
 0x253   :  { %v584_v57 = vmul.f32 0.35355338, %v579_v51 }
 0x255   :  { %v2501_v60 = vadd.f32 %v2484_v32, %v584_v57 }
 0x257   :  { %v590_v0 = vsel %vm184_vm8, %v2501_v60, -inf }
 0x25a   :  { %v581_v55 = vpop.f32.mrf.mxu1 }
 0x261   :  { %359 = vmax.xlane.f32.xlu2 %v358_v58 }
 0x269   :  { %591 = vmax.xlane.f32.xlu2 %v590_v0 }
 0x26a   :  { %472 = vmax.xlane.f32.xlu1 %v471_v1 }
 0x26e   :  { %475 = vmax.xlane.f32.xlu0 %v474_v5 }
 0x276   :  { %588 = vmax.xlane.f32.xlu0 %v587_v7 }
 0x28b   :  { %v240_v8 = vpop.xlane.xlu2 %239 }
 0x28c   :  { %v244_v9 = vsub.f32 %v236_v29, %v240_v8 }
 0x28e   :  { %v246_v10 = vmul.f32 1.442695, %v244_v9 }
 0x290   :  { %2143 = vpow2.f32 %v246_v10 }
 0x293   :  { %v285_v22 = vpop.permute.xlu2 %284 }
 0x294   :  { %v290_v27 = vsel %vm267_vm9, %v285_v22, 0 }
 0x296   :  { %v2511_v11 = vpop.eup %2143 }
 0x297   :  { %v250_v12 = vsel %vm184_vm8, %v2511_v11, 0.0 }
 0x298   :  { %251 = vadd.xlane.f32.xlu2 %v250_v12 }
 0x29a   :  { %v243_v13 = vpop.xlane.xlu1 %242 }
 0x29b   :  { %v245_v17 = vsub.f32 %v237_v35, %v243_v13  ;;  %v401_v31 = vpop.permute.xlu2 %400 }
 0x29c   :  { %v406_v0 = vsel %vm267_vm9, %v401_v31, 0 }
 0x29d   :  { %v248_v19 = vmul.f32 1.442695, %v245_v17 }
 0x2a3   :  { %v357_v15 = vpop.xlane.xlu0 %356 }
 0x2a4   :  { %v361_v16 = vsub.f32 %v353_v40, %v357_v15 }
 0x2a6   :  { %v363_v18 = vmul.f32 1.442695, %v361_v16 }
 0x2a8   :  { %2145 = vpow2.f32 %v363_v18 }
 0x2a9   :  { %2147 = vpow2.f32 %v248_v19 }
 0x2ae   :  { %v2515_v20 = vpop.eup %2145 }
 0x2af   :  { %v367_v21 = vsel %vm184_vm8, %v2515_v20, 0.0  ;;  %v2522_v25 = vpop.eup %2147 }
 0x2b0   :  { %368 = vadd.xlane.f32.xlu0 %v367_v21  ;;  %516 = vrot.lane.b32.xlu2 %v2432_v2, %s2915_s29  ;;  %v253_v29 = vsel %vm184_vm8, %v2522_v25, 0.0 }
 0x2b2   :  { %v263_v23 = vpop.permute.xlu1 %262 }
 0x2b3   :  { %v269_v24 = vsel %vm267_vm9, %v263_v23, 0 }
 0x2b4   :  { %278 = vmatpush.bf16.msra.mxu3 %v269_v24 }
 0x2b6   :  { %v380_v28 = vpop.permute.xlu0 %379 }
 0x2b7   :  { %v385_v30 = vsel %vm267_vm9, %v380_v28, 0 }
 0x2b8   :  { %299 = vmatpush.bf16.msrb.mxu3 %v290_v27  ;;  %254 = vadd.xlane.f32.xlu0 %v253_v29 }
 0x2b9   :  { %394 = vmatpush.bf16.msrb.mxu2 %v385_v30 }
 0x2d4   :  { %v360_v33 = vpop.xlane.xlu2 %359 }
 0x2d5   :  { %v362_v34 = vsub.f32 %v354_v56, %v360_v33 }
 0x2d7   :  { %v365_v35 = vmul.f32 1.442695, %v362_v34 }
 0x2d9   :  { %2149 = vpow2.f32 %v365_v35 }
 0x2dc   :  { %v592_v55 = vpop.xlane.xlu2 %591 }
 0x2dd   :  { %v473_v36 = vpop.xlane.xlu1 %472  ;;  %v594_v58 = vsub.f32 %v2501_v60, %v592_v55 }
 0x2de   :  { %v477_v37 = vsub.f32 %v469_v63, %v473_v36 }
 0x2df   :  { %v2150_v38 = vpop.eup %2149  ;;  %v597_v63 = vmul.f32 1.442695, %v594_v58 }
 0x2e0   :  { %v479_v39 = vmul.f32 1.442695, %v477_v37  ;;  %v370_v40 = vsel %vm184_vm8, %v2150_v38, 0.0 }
 0x2e1   :  { %v476_v41 = vpop.xlane.xlu0 %475  ;;  %371 = vadd.xlane.f32.xlu1 %v370_v40 }
 0x2e2   :  { %2151 = vpow2.f32 %v479_v39  ;;  %v478_v42 = vsub.f32 %v470_v3, %v476_v41 }
 0x2e4   :  { %v481_v43 = vmul.f32 1.442695, %v478_v42 }
 0x2e6   :  { %2153 = vpow2.f32 %v481_v43 }
 0x2e8   :  { %v2529_v44 = vpop.eup %2151 }
 0x2e9   :  { %v589_v45 = vpop.xlane.xlu0 %588  ;;  %v483_v46 = vsel %vm184_vm8, %v2529_v44, 0.0 }
 0x2ea   :  { %v593_v47 = vsub.f32 %v585_v6, %v589_v45  ;;  %484 = vadd.xlane.f32.xlu2 %v483_v46 }
 0x2ec   :  { %v2154_v48 = vpop.eup %2153  ;;  %v595_v49 = vmul.f32 1.442695, %v593_v47 }
 0x2ed   :  { %v486_v50 = vsel %vm184_vm8, %v2154_v48, 0.0 }
 0x2ee   :  { %2155 = vpow2.f32 %v595_v49  ;;  %487 = vadd.xlane.f32.xlu0 %v486_v50 }
 0x2f4   :  { %v2534_v51 = vpop.eup %2155 }
 0x2f5   :  { %v599_v52 = vsel %vm184_vm8, %v2534_v51, 0.0 }
 0x2f6   :  { %600 = vadd.xlane.f32.xlu0 %v599_v52 }
 0x2fa   :  { %495 = vrot.lane.b32.xlu1 %v2426_v61, %s2915_s29  ;;  %s2948_s29 = smov 48  }
 0x302   :  { %632 = vrot.lane.b32.xlu2 %v2432_v2, %s2913_s30 }
 0x30a   :  { %611 = vrot.lane.b32.xlu0 %v2426_v61, %s2913_s30  ;;  %s2922_s30 = smov 24  }
 0x30b   :  { %v252_v56 = vpop.xlane.xlu2 %251 }
 0x30c   :  { %2157 = vrcp.f32 %v252_v56 }
 0x30d   :  { %2159 = vpow2.f32 %v597_v63  ;;  %v2048_v63 = vld [vmem:[%s2895_s6 + $0x8] sm:$0xff] }
 0x30e   :  { %715 = vmatpush.bf16.msra.mxu0 %v2048_v63 }
 0x312   :  { %v2158_v57 = vpop.eup %2157 }
 0x313   :  { %v258_v59 = vmul.f32 %v2158_v57, %v2511_v11  ;;  %v2160_v2 = vpop.eup %2159  ;;  %v517_v8 = vpop.permute.xlu2 %516 }
 0x314   :  { %v602_v3 = vsel %vm184_vm8, %v2160_v2, 0.0  ;;  %v522_v10 = vsel %vm267_vm9, %v517_v8, 0 }
 0x315   :  { %v260_v62 = vpack.c.bf16 %v258_v59, %v258_v59 }
 0x317   :  { %1890 = vmatmul.msk.bf16.vlgmr.msra.gmra.mxu3 %vm184_vm8, %v260_v62 }
 0x318   :  { %415 = vmatpush.bf16.msra.mxu3 %v406_v0  ;;  %v2047_v0 = vld [vmem:[%s2895_s6] sm:$0xff] }
 0x319   :  { %716 = vmatpush.bf16.msra.mxu0 %v2047_v0 }
 0x323   :  { %v369_v1 = vpop.xlane.xlu0 %368 }
 0x324   :  { %2161 = vrcp.f32 %v369_v1  ;;  %603 = vadd.xlane.f32.xlu1 %v602_v3 }
 0x32a   :  { %v2162_v61 = vpop.eup %2161 }
 0x32b   :  { %v375_v4 = vmul.f32 %v2162_v61, %v2515_v20  ;;  %v255_v60 = vpop.xlane.xlu0 %254 }
 0x32c   :  { %2163 = vrcp.f32 %v255_v60 }
 0x32d   :  { %v377_v5 = vpack.c.bf16 %v375_v4, %v375_v4 }
 0x32f   :  { %1894 = vmatmul.msk.bf16.vlgmr.msrb.gmra.mxu2 %vm184_vm8, %v377_v5 }
 0x332   :  { %v2164_v6 = vpop.eup %2163 }
 0x333   :  { %v259_v7 = vmul.f32 %v2164_v6, %v2522_v25 }
 0x335   :  { %v261_v9 = vpack.c.bf16 %v259_v7, %v259_v7 }
 0x337   :  { %1891 = vmatmul.msk.bf16.vlgmr.msrb.gmra.mxu3 %vm184_vm8, %v261_v9 }
 0x338   :  { %531 = vmatpush.bf16.msrb.mxu3 %v522_v10 }
 0x354   :  { %v372_v11 = vpop.xlane.xlu1 %371 }
 0x355   :  { %2165 = vrcp.f32 %v372_v11 }
 0x35b   :  { %v2166_v12 = vpop.eup %2165 }
 0x35c   :  { %v376_v13 = vmul.f32 %v2166_v12, %v2150_v38 }
 0x35d   :  { %v485_v15 = vpop.xlane.xlu2 %484 }
 0x35e   :  { %v378_v16 = vpack.c.bf16 %v376_v13, %v376_v13  ;;  %2167 = vrcp.f32 %v485_v15 }
 0x360   :  { %1895 = vmatmul.msk.bf16.vlgmr.msra.gmra.mxu3 %vm184_vm8, %v378_v16  ;;  %v2120_v16 = vld [vmem:[%s2896_s7] ss:$0 sm:$0xff] }
 0x361   :  { %v488_v17 = vpop.xlane.xlu0 %487 }
 0x362   :  { %2169 = vrcp.f32 %v488_v17 }
 0x364   :  { %v2168_v20 = vpop.eup %2167 }
 0x365   :  { %v633_v18 = vpop.permute.xlu2 %632  ;;  %v491_v23 = vmul.f32 %v2168_v20, %v2529_v44 }
 0x366   :  { %v638_v19 = vsel %vm267_vm9, %v633_v18, 0 }
 0x367   :  { %647 = vmatpush.bf16.msra.mxu3 %v638_v19  ;;  %v493_v28 = vpack.c.bf16 %v491_v23, %v491_v23 }
 0x368   :  { %v2170_v21 = vpop.eup %2169 }
 0x369   :  { %v492_v22 = vmul.f32 %v2170_v21, %v2154_v48  ;;  %v601_v29 = vpop.xlane.xlu0 %600 }
 0x36a   :  { %2171 = vrcp.f32 %v601_v29 }
 0x36b   :  { %v494_v27 = vpack.c.bf16 %v492_v22, %v492_v22 }
 0x36c   :  { %v496_v24 = vpop.permute.xlu1 %495 }
 0x36d   :  { %v501_v25 = vsel %vm267_vm9, %v496_v24, 0 }
 0x36e   :  { %510 = vmatpush.bf16.msra.mxu2 %v501_v25 }
 0x370   :  { %1899 = vmatmul.msk.bf16.vlgmr.msrb.gmra.mxu3 %vm184_vm8, %v494_v27  ;;  %v2172_v30 = vpop.eup %2171 }
 0x371   :  { %1898 = vmatmul.msk.bf16.vlgmr.msra.gmra.mxu2 %vm184_vm8, %v493_v28  ;;  %v607_v31 = vmul.f32 %v2172_v30, %v2534_v51 }
 0x373   :  { %v609_v35 = vpack.c.bf16 %v607_v31, %v607_v31 }
 0x37c   :  { %v612_v33 = vpop.permute.xlu0 %611 }
 0x37d   :  { %v617_v34 = vsel %vm267_vm9, %v612_v33, 0 }
 0x37e   :  { %626 = vmatpush.bf16.msrb.mxu2 %v617_v34 }
 0x381   :  { %1902 = vmatmul.msk.bf16.vlgmr.msrb.gmra.mxu2 %vm184_vm8, %v609_v35  ;;  %v2050_v35 = vld [vmem:[%s2899_s10 + $0x8] sm:$0xff] }
 0x382   :  { %815 = vmatpush.bf16.msra.mxu1 %v2050_v35 }
 0x397   :  { %v604_v36 = vpop.xlane.xlu1 %603 }
 0x398   :  { %2173 = vrcp.f32 %v604_v36 }
 0x39a   :  { %v280_v37 = vpop.f32.mrf.mxu3 }
 0x39e   :  { %v2174_v38 = vpop.eup %2173 }
 0x39f   :  { %v608_v39 = vmul.f32 %v2174_v38, %v2160_v2 }
 0x3a1   :  { %v610_v40 = vpack.c.bf16 %v608_v39, %v608_v39 }
 0x3a2   :  { %v282_v41 = vpop.f32.mrf.mxu3 }
 0x3a3   :  { %1903 = vmatmul.msk.bf16.vlgmr.msra.gmra.mxu3 %vm184_vm8, %v610_v40 }
 0x3b2   :  { %v396_v42 = vpop.f32.mrf.mxu2 }
 0x3ba   :  { %v301_v43 = vpop.f32.mrf.mxu3  ;;  %v398_v44 = vpop.f32.mrf.mxu2 }
 0x3c2   :  { %v303_v45 = vpop.f32.mrf.mxu3 }
 0x3e3   :  { %v417_v46 = vpop.f32.mrf.mxu3 }
 0x3e4   :  { %v2085_v47 = vpack.i.bf16 %v417_v46, %v396_v42 }
 0x3e6   :  { %2086 = vrot.lane.b32.xlu0 %v2085_v47, %s2919_s21  ;;  %s2950_s21 = smov 8  }
 0x3eb   :  { %v419_v48 = vpop.f32.mrf.mxu3 }
 0x3f3   :  { %v533_v49 = vpop.f32.mrf.mxu3 }
 0x3f4   :  { %v512_v50 = vpop.f32.mrf.mxu2 }
 0x3f5   :  { %v2090_v51 = vpack.i.bf16 %v533_v49, %v512_v50 }
 0x3f7   :  { %2091 = vrot.lane.b32.xlu2 %v2090_v51, %s2923_s1 }
 0x3fb   :  { %v535_v52 = vpop.f32.mrf.mxu3 }
 0x3fc   :  { %v514_v55 = vpop.f32.mrf.mxu2 }
 0x404   :  { %v628_v56 = vpop.f32.mrf.mxu2 }
 0x40c   :  { %v630_v57 = vpop.f32.mrf.mxu2 }
 0x426   :  { %v649_v58 = vpop.f32.mrf.mxu3 }
 0x427   :  { %v2095_v59 = vpack.i.bf16 %v649_v58, %v628_v56 }
 0x429   :  { %2096 = vrot.lane.b32.xlu0 %v2095_v59, %s2922_s30 }
 0x42e   :  { %v651_v62 = vpop.f32.mrf.mxu3 }
 0x42f   :  { %v2121_v62 = vld [vmem:[%s2897_s8] ss:$0 sm:$0xff] }
 0x451   :  { %v2092_v61 = vpop.permute.xlu2 %2091 }
 0x452   :  { %v2094_v5 = vunpack.i.h.bf16 %v2092_v61  ;;  %v2093_v6 = vunpack.i.l.bf16 %v2092_v61 }
 0x458   :  { %v2087_v2 = vpop.permute.xlu0 %2086 }
 0x459   :  { %v2089_v1 = vunpack.i.h.bf16 %v2087_v2  ;;  %v2088_v3 = vunpack.i.l.bf16 %v2087_v2 }
 0x45b   :  { %v678_v4 = vsel %vm184_vm8, %v301_v43, %v2089_v1  ;;  %v677_v60 = vsel %vm184_vm8, %v280_v37, %v2088_v3 }
 0x45c   :  { %v680_v10 = vsel %vm679_vm10, %v677_v60, %v2093_v6  ;;  %v681_v11 = vsel %vm679_vm10, %v678_v4, %v2094_v5  ;;  %v2122_v4 = vld [vmem:[%s2898_s9] ss:$0 sm:$0xff] }
 0x49b   :  { %v2097_v7 = vpop.permute.xlu0 %2096 }
 0x49c   :  { %v2099_v8 = vunpack.i.h.bf16 %v2097_v7  ;;  %v2098_v9 = vunpack.i.l.bf16 %v2097_v7 }
 0x49e   :  { %v683_v12 = vsel %vm682_vm11, %v680_v10, %v2098_v9  ;;  %v684_v13 = vsel %vm682_vm11, %v681_v11, %v2099_v8  ;;  %v2054_v8 = vld [vmem:[%s2901_s12 + $0x18] sm:$0xff]  ;;  %v2053_v9 = vld [vmem:[%s2901_s12 + $0x10] sm:$0xff]  ;;  %v2052_v10 = vld [vmem:[%s2901_s12 + $0x8] sm:$0xff] }
 0x49f   :  { %v689_v15 = vpack.c.bf16 %v684_v13, %v683_v12  ;;  %886 = vmatpush.bf16.msra.mxu2 %v2054_v8  ;;  %v2123_v11 = vld [vmem:[%s2900_s11] ss:$0 sm:$0xff] }
 0x4a0   :  { %v2051_v13 = vld [vmem:[%s2901_s12] sm:$0xff] }
 0x4a1   :  { %1912 = vmatmul.msk.bf16.vlgmr.msra.gmra.mxu0 %vm73_vm0, %v689_v15 }
 0x4a3   :  { %887 = vmatpush.bf16.msra.mxu2 %v2053_v9 }
 0x4a7   :  { %888 = vmatpush.bf16.msra.mxu2 %v2052_v10 }
 0x4ab   :  { %889 = vmatpush.bf16.msra.mxu2 %v2051_v13 }
 0x51e   :  { %v718_v17 = vpop.f32.mrf.mxu0 }
 0x51f   :  { %v719_v18 = vadd.f32 %v2120_v16, %v718_v17 }
 0x521   :  { %v723_v19 = vadd.f32 %v719_v18, %v2416_v53 }
 0x523   :  { %v727_v20 = vsel %vm73_vm0, %v723_v19, 0.0  ;;  %v735_v21 = vmul.f32 %v723_v19, %v723_v19 }
 0x524   :  { %728 = vadd.xlane.f32.xlu2 %v727_v20 }
 0x525   :  { %v737_v22 = vsel %vm73_vm0, %v735_v21, 0.0 }
 0x526   :  { %v720_v23 = vpop.f32.mrf.mxu0  ;;  %738 = vadd.xlane.f32.xlu1 %v737_v22 }
 0x527   :  { %v721_v24 = vadd.f32 %v2120_v16, %v720_v23 }
 0x529   :  { %v724_v25 = vadd.f32 %v721_v24, %v2418_v54  ;;  %v2049_v54 = vld [vmem:[%s2899_s10] sm:$0xff] }
 0x52a   :  { %816 = vmatpush.bf16.msra.mxu1 %v2049_v54 }
 0x52b   :  { %v730_v27 = vsel %vm73_vm0, %v724_v25, 0.0  ;;  %v736_v28 = vmul.f32 %v724_v25, %v724_v25 }
 0x52c   :  { %731 = vadd.xlane.f32.xlu0 %v730_v27 }
 0x52d   :  { %v740_v29 = vsel %vm73_vm0, %v736_v28, 0.0 }
 0x52e   :  { %741 = vadd.xlane.f32.xlu1 %v740_v29 }
 0x597   :  { %v729_v30 = vpop.xlane.xlu2 %728 }
 0x598   :  { %v733_v53 = vmul.f32 %v729_v30, %v2397_v14 }
 0x599   :  { %v739_v31 = vpop.xlane.xlu1 %738 }
 0x59a   :  { %v745_v33 = vmul.f32 %v733_v53, %v733_v53  ;;  %v743_v34 = vmul.f32 %v739_v31, %v2397_v14  ;;  %v749_v58 = vsub.f32 %v723_v19, %v733_v53 }
 0x59c   :  { %v747_v36 = vsub.f32 %v743_v34, %v745_v33 }
 0x59e   :  { %v751_v37 = vadd.f32 1e-12, %v747_v36 }
 0x59f   :  { %v732_v38 = vpop.xlane.xlu0 %731 }
 0x5a0   :  { %2175 = vrsqrt.f32 %v751_v37  ;;  %v734_v39 = vmul.f32 %v732_v38, %v2397_v14  ;;  %vm759_vm13 = vweird.f32 %v751_v37 }
 0x5a1   :  { %v742_v40 = vpop.xlane.xlu1 %741 }
 0x5a2   :  { %v746_v41 = vmul.f32 %v734_v39, %v734_v39  ;;  %v744_v42 = vmul.f32 %v742_v40, %v2397_v14  ;;  %v750_v2 = vsub.f32 %v724_v25, %v734_v39 }
 0x5a4   :  { %v748_v43 = vsub.f32 %v744_v42, %v746_v41 }
 0x5a6   :  { %v2176_v44 = vpop.eup %2175  ;;  %v752_v45 = vadd.f32 1e-12, %v748_v43 }
 0x5a7   :  { %v754_v46 = vmul.f32 %v2176_v44, %v751_v37  ;;  %vm760_vm12 = vweird.f32 %v2176_v44  ;;  %v2124_v37 = vld [vmem:[%s2902_s13] ss:$0 sm:$0xff] }
 0x5a8   :  { %2177 = vrsqrt.f32 %v752_v45  ;;  %vm761_vm14 = vmor %vm759_vm13, %vm760_vm12  ;;  %vm769_vm1 = vweird.f32 %v752_v45 }
 0x5a9   :  { %v755_v47 = vmul.f32 %v2176_v44, %v754_v46 }
 0x5ab   :  { %v756_v48 = vmul.f32 0.5, %v755_v47 }
 0x5ad   :  { %v757_v49 = vsub.f32 1.5, %v756_v48 }
 0x5ae   :  { %v2178_v50 = vpop.eup %2177 }
 0x5af   :  { %v758_v51 = vmul.f32 %v2176_v44, %v757_v49  ;;  %v764_v52 = vmul.f32 %v2178_v50, %v752_v45  ;;  %vm770_vm15 = vweird.f32 %v2178_v50 }
 0x5b0   :  { %vm771_vm2 = vmor %vm769_vm1, %vm770_vm15 }
 0x5b1   :  { %v765_v55 = vmul.f32 %v2178_v50, %v764_v52  ;;  %v762_v56 = vsel %vm761_vm14, %v2176_v44, %v758_v51 }
 0x5b2   :  { %v773_v63 = vmul.f32 %v762_v56, %v749_v58 }
 0x5b3   :  { %v766_v57 = vmul.f32 0.5, %v765_v55  ;;  %v2056_v55 = vld [vmem:[%s2938_s26 + $0x18] sm:$0xff] }
 0x5b4   :  { %v778_v3 = vmul.f32 %v2121_v62, %v773_v63  ;;  %990 = vmatpush.bf16.msrb.mxu3 %v2056_v55 }
 0x5b5   :  { %v767_v59 = vsub.f32 1.5, %v766_v57 }
 0x5b6   :  { %v783_v5 = vadd.f32 %v2122_v4, %v778_v3 }
 0x5b7   :  { %v768_v0 = vmul.f32 %v2178_v50, %v767_v59  ;;  %v2055_v59 = vld [vmem:[%s2938_s26 + $0x10] sm:$0xff]  ;;  %s2947_s26 = smov 56  }
 0x5b8   :  { %991 = vmatpush.bf16.msrb.mxu3 %v2055_v59 }
 0x5b9   :  { %v772_v1 = vsel %vm771_vm2, %v2178_v50, %v768_v0 }
 0x5ba   :  { %v774_v61 = vmul.f32 %v772_v1, %v750_v2 }
 0x5bc   :  { %v779_v60 = vmul.f32 %v2121_v62, %v774_v61 }
 0x5be   :  { %v784_v6 = vadd.f32 %v2122_v4, %v779_v60 }
 0x5c0   :  { %v789_v7 = vpack.c.bf16 %v784_v6, %v783_v5 }
 0x5c2   :  { %1921 = vmatmul.msk.bf16.vlgmr.msra.gmra.mxu1 %vm73_vm0, %v789_v7 }
 0x63f   :  { %v818_v12 = vpop.f32.mrf.mxu1 }
 0x640   :  { %v819_v15 = vadd.f32 %v2123_v11, %v818_v12 }
 0x642   :  { %v823_v16 = vmul.f32 %v819_v15, %v819_v15 }
 0x644   :  { %v825_v17 = vmul.f32 %v823_v16, %v819_v15 }
 0x646   :  { %v827_v18 = vmul.f32 0.044715, %v825_v17 }
 0x647   :  { %v820_v19 = vpop.f32.mrf.mxu1 }
 0x648   :  { %v829_v20 = vadd.f32 %v827_v18, %v819_v15  ;;  %v821_v21 = vadd.f32 %v2123_v11, %v820_v19  ;;  %v2125_v18 = vld [vmem:[%s2903_s14] ss:$0 sm:$0xff] }
 0x64a   :  { %v831_v22 = vmul.f32 0.7978846, %v829_v20  ;;  %v824_v23 = vmul.f32 %v821_v21, %v821_v21 }
 0x64c   :  { %v826_v24 = vmul.f32 %v824_v23, %v821_v21  ;;  %2179 = vtanh.f32 %v831_v22 }
 0x64e   :  { %v828_v25 = vmul.f32 0.044715, %v826_v24 }
 0x650   :  { %v830_v27 = vadd.f32 %v828_v25, %v821_v21  ;;  %v2126_v25 = vld [vmem:[%s2904_s15] ss:$0 sm:$0xff] }
 0x652   :  { %v832_v28 = vmul.f32 0.7978846, %v830_v27  ;;  %v2180_v29 = vpop.eup %2179 }
 0x653   :  { %v835_v30 = vadd.f32 1.0, %v2180_v29 }
 0x654   :  { %2181 = vtanh.f32 %v832_v28 }
 0x655   :  { %v837_v31 = vmul.f32 0.5, %v835_v30 }
 0x657   :  { %v839_v35 = vmul.f32 %v837_v31, %v819_v15 }
 0x65a   :  { %v2182_v53 = vpop.eup %2181 }
 0x65b   :  { %v836_v33 = vadd.f32 1.0, %v2182_v53  ;;  %v2127_v53 = vld [vmem:[%s2894_s5 + $0x1] ss:$0 sm:$0xff]  ;;  %s2942_s5 = smov 112  }
 0x65d   :  { %v838_v34 = vmul.f32 0.5, %v836_v33 }
 0x65f   :  { %v840_v36 = vmul.f32 %v838_v34, %v821_v21 }
 0x661   :  { %v849_v54 = vpack.c.bf16 %v840_v36, %v839_v35 }
 0x663   :  { %1938 = vmatmul.msk.bf16.vlgmr.msra.gmra.mxu2 %vm878_vm3, %v849_v54 }
 0x6e6   :  { %v891_v38 = vpop.f32.mrf.mxu2 }
 0x6e7   :  { %v892_v39 = vadd.f32 %v2124_v37, %v891_v38 }
 0x6e9   :  { %v896_v40 = vadd.f32 %v892_v39, %v783_v5 }
 0x6eb   :  { %v900_v41 = vsel %vm73_vm0, %v896_v40, 0.0  ;;  %v908_v48 = vmul.f32 %v896_v40, %v896_v40 }
 0x6ec   :  { %901 = vadd.xlane.f32.xlu1 %v900_v41 }
 0x6ed   :  { %v910_v49 = vsel %vm73_vm0, %v908_v48, 0.0 }
 0x6ee   :  { %v893_v42 = vpop.f32.mrf.mxu2 }
 0x6ef   :  { %v894_v43 = vadd.f32 %v2124_v37, %v893_v42 }
 0x6f1   :  { %v897_v44 = vadd.f32 %v894_v43, %v784_v6 }
 0x6f3   :  { %v903_v45 = vsel %vm73_vm0, %v897_v44, 0.0  ;;  %v909_v46 = vmul.f32 %v897_v44, %v897_v44 }
 0x6f4   :  { %904 = vadd.xlane.f32.xlu1 %v903_v45 }
 0x6f5   :  { %v913_v47 = vsel %vm73_vm0, %v909_v46, 0.0 }
 0x6f6   :  { %914 = vadd.xlane.f32.xlu2 %v913_v47 }
 0x6fc   :  { %911 = vadd.xlane.f32.xlu1 %v910_v49 }
 0x75f   :  { %v902_v50 = vpop.xlane.xlu1 %901 }
 0x760   :  { %v906_v62 = vmul.f32 %v902_v50, %v2397_v14 }
 0x762   :  { %v918_v1 = vmul.f32 %v906_v62, %v906_v62  ;;  %v922_v21 = vsub.f32 %v896_v40, %v906_v62 }
 0x767   :  { %v905_v51 = vpop.xlane.xlu1 %904 }
 0x768   :  { %v907_v52 = vmul.f32 %v905_v51, %v2397_v14 }
 0x769   :  { %v915_v56 = vpop.xlane.xlu2 %914 }
 0x76a   :  { %v919_v57 = vmul.f32 %v907_v52, %v907_v52  ;;  %v917_v58 = vmul.f32 %v915_v56, %v2397_v14  ;;  %v923_v16 = vsub.f32 %v897_v44, %v907_v52 }
 0x76c   :  { %v921_v63 = vsub.f32 %v917_v58, %v919_v57 }
 0x76e   :  { %v925_v0 = vadd.f32 1e-12, %v921_v63 }
 0x76f   :  { %v912_v2 = vpop.xlane.xlu1 %911 }
 0x770   :  { %2183 = vrsqrt.f32 %v925_v0  ;;  %v916_v3 = vmul.f32 %v912_v2, %v2397_v14  ;;  %vm942_vm5 = vweird.f32 %v925_v0 }
 0x772   :  { %v920_v61 = vsub.f32 %v916_v3, %v918_v1 }
 0x774   :  { %v924_v4 = vadd.f32 1e-12, %v920_v61 }
 0x776   :  { %v2184_v60 = vpop.eup %2183  ;;  %2185 = vrsqrt.f32 %v924_v4  ;;  %vm932_vm12 = vweird.f32 %v924_v4 }
 0x777   :  { %v937_v5 = vmul.f32 %v2184_v60, %v925_v0  ;;  %vm943_vm4 = vweird.f32 %v2184_v60 }
 0x778   :  { %vm944_vm6 = vmor %vm942_vm5, %vm943_vm4 }
 0x779   :  { %v938_v6 = vmul.f32 %v2184_v60, %v937_v5 }
 0x77b   :  { %v939_v7 = vmul.f32 0.5, %v938_v6 }
 0x77c   :  { %v2186_v8 = vpop.eup %2185 }
 0x77d   :  { %v940_v9 = vsub.f32 1.5, %v939_v7  ;;  %v927_v10 = vmul.f32 %v2186_v8, %v924_v4  ;;  %vm933_vm7 = vweird.f32 %v2186_v8 }
 0x77e   :  { %vm934_vm13 = vmor %vm932_vm12, %vm933_vm7  ;;  %vm1793_vm7 = vcmask 1041409  }
 0x77f   :  { %v941_v11 = vmul.f32 %v2184_v60, %v940_v9  ;;  %v928_v12 = vmul.f32 %v2186_v8, %v927_v10 }
 0x781   :  { %v945_v13 = vsel %vm944_vm6, %v2184_v60, %v941_v11  ;;  %v929_v15 = vmul.f32 0.5, %v928_v12 }
 0x782   :  { %v947_v19 = vmul.f32 %v945_v13, %v923_v16 }
 0x783   :  { %v930_v17 = vsub.f32 1.5, %v929_v15 }
 0x784   :  { %v952_v23 = vmul.f32 %v2125_v18, %v947_v19 }
 0x785   :  { %v931_v20 = vmul.f32 %v2186_v8, %v930_v17 }
 0x786   :  { %v2647_v29 = vadd.f32 %v2126_v25, %v952_v23 }
 0x787   :  { %v935_v22 = vsel %vm934_vm13, %v2186_v8, %v931_v20 }
 0x788   :  { %v946_v24 = vmul.f32 %v935_v22, %v922_v21 }
 0x78a   :  { %v951_v27 = vmul.f32 %v2125_v18, %v946_v24 }
 0x78c   :  { %v2645_v28 = vadd.f32 %v2126_v25, %v951_v27 }
 0x78e   :  { %v963_v30 = vpack.c.bf16 %v2647_v29, %v2645_v28 }
 0x790   :  { %1952 = vmatmul.msk.bf16.vlgmr.msrb.gmra.mxu3 %vm73_vm0, %v963_v30 }
 0x813   :  { %v993_v31 = vpop.f32.mrf.mxu3 }
 0x814   :  { %v994_v33 = vadd.f32 %v2127_v53, %v993_v31 }
 0x816   :  { %v998_v34 = vpack.c.bf16 %v994_v33, %v994_v33 }
 0x818   :  { %v1001_v35 = vunpack.c.l.b16 %v998_v34 }
 0x81a   :  { %v2655_v36 = vpack.c.b16 %v1001_v35, %v1001_v35 }
 0x81b   :  { %v995_v54 = vpop.f32.mrf.mxu3 }
 0x81c   :  { %v996_v37 = vadd.f32 %v2127_v53, %v995_v54  ;;  %1120 = vrot.lane.b32.xlu2 %v2655_v36, %s2262_s24  ;;  %1003 = vrot.lane.b32.xlu1 %v2655_v36, %s2263_s2 }
 0x81e   :  { %v999_v38 = vpack.c.bf16 %v996_v37, %v996_v37 }
 0x820   :  { %v1025_v39 = vunpack.c.l.b16 %v999_v38 }
 0x822   :  { %v2661_v40 = vpack.c.b16 %v1025_v39, %v1025_v39 }
 0x824   :  { %1027 = vrot.lane.b32.xlu0 %v2661_v40, %s2263_s2  ;;  %1141 = vrot.lane.b32.xlu2 %v2661_v40, %s2267_s28  ;;  %s2945_s2 = smov 104  }
 0x825   :  { %1118 = vrot.lane.b32.xlu1 %v2655_v36, %s2267_s28 }
 0x82c   :  { %1143 = vrot.lane.b32.xlu0 %v2661_v40, %s2262_s24  ;;  %1234 = vrot.lane.b32.xlu2 %v2655_v36, %s2942_s5  ;;  %s2946_s24 = smov 64  }
 0x82d   :  { %1259 = vrot.lane.b32.xlu1 %v2661_v40, %s2943_s3 }
 0x834   :  { %1236 = vrot.lane.b32.xlu0 %v2655_v36, %s2943_s3  ;;  %1375 = vrot.lane.b32.xlu2 %v2661_v40, %s2944_s27 }
 0x835   :  { %1352 = vrot.lane.b32.xlu1 %v2655_v36, %s2944_s27 }
 0x83c   :  { %1257 = vrot.lane.b32.xlu0 %v2661_v40, %s2942_s5 }
 0x83d   :  { %1373 = vrot.lane.b32.xlu1 %v2661_v40, %s2945_s2 }
 0x844   :  { %1350 = vrot.lane.b32.xlu0 %v2655_v36, %s2945_s2 }
 0x84c   :  { %1076 = vrot.lane.b32.xlu0 %v2655_v36, %s2946_s24 }
 0x876   :  { %v1121_v41 = vpop.permute.xlu2 %1120 }
 0x877   :  { %v1126_v44 = vsel %vm184_vm8, %v1121_v41, 0 }
 0x87e   :  { %v1142_v48 = vpop.permute.xlu2 %1141 }
 0x886   :  { %v1235_v55 = vpop.permute.xlu2 %1234 }
 0x88e   :  { %v1004_v42 = vpop.permute.xlu1 %1003  ;;  %v1376_v62 = vpop.permute.xlu2 %1375 }
 0x88f   :  { %v1009_v43 = vsel %vm184_vm8, %v1004_v42, 0  ;;  %v1381_v0 = vsel %vm184_vm8, %v1376_v62, 0 }
 0x890   :  { %1018 = vmatpush.bf16.xpose.msrb.mxu0 %v1009_v43 }
 0x896   :  { %v1028_v45 = vpop.permute.xlu0 %1027 }
 0x897   :  { %v1033_v46 = vsel %vm184_vm8, %v1028_v45, 0  ;;  %v1119_v47 = vpop.permute.xlu1 %1118  ;;  %1953 = vmatmul.msk.bf16.vlgmr.msrb.gmra.mxu0 %vm184_vm8, %v998_v34 }
 0x898   :  { %1135 = vmatpush.bf16.xpose.msra.mxu0 %v1126_v44  ;;  %1042 = vmatpush.bf16.xpose.msrb.mxu1 %v1033_v46  ;;  %v2234_v44 = vld [vmem:[%s2941_s0 + $0x1] ss:$0 sm:$0xff] }
 0x89e   :  { %v1144_v49 = vpop.permute.xlu0 %1143 }
 0x89f   :  { %v1149_v50 = vsel %vm184_vm8, %v1144_v49, 0  ;;  %v1260_v51 = vpop.permute.xlu1 %1259  ;;  %1954 = vmatmul.msk.bf16.vlgmr.msrb.gmra.mxu1 %vm184_vm8, %v999_v38 }
 0x8a0   :  { %v1265_v52 = vsel %vm184_vm8, %v1260_v51, 0  ;;  %1158 = vmatpush.bf16.xpose.msra.mxu1 %v1149_v50 }
 0x8a6   :  { %v1237_v56 = vpop.permute.xlu0 %1236 }
 0x8a7   :  { %v1242_v57 = vsel %vm184_vm8, %v1237_v56, 0  ;;  %v1353_v58 = vpop.permute.xlu1 %1352  ;;  %1957 = vmatmul.msk.bf16.vlgmr.msra.gmra.mxu0 %vm184_vm8, %v1119_v47 }
 0x8a8   :  { %1274 = vmatpush.bf16.xpose.msrb.mxu1 %v1265_v52  ;;  %v1358_v59 = vsel %vm184_vm8, %v1353_v58, 0  ;;  %1251 = vmatpush.bf16.xpose.msrb.mxu0 %v1242_v57 }
 0x8ae   :  { %v1258_v63 = vpop.permute.xlu0 %1257 }
 0x8af   :  { %1958 = vmatmul.msk.bf16.vlgmr.msra.gmra.mxu1 %vm184_vm8, %v1142_v48  ;;  %v1374_v61 = vpop.permute.xlu1 %1373 }
 0x8b0   :  { %1367 = vmatpush.bf16.xpose.msra.mxu0 %v1358_v59  ;;  %1390 = vmatpush.bf16.xpose.msra.mxu1 %v1381_v0 }
 0x8b6   :  { %v1351_v2 = vpop.permute.xlu0 %1350 }
 0x8b7   :  { %1961 = vmatmul.msk.bf16.vlgmr.msrb.gmra.mxu0 %vm184_vm8, %v1235_v55 }
 0x8be   :  { %v1077_v1 = vpop.permute.xlu0 %1076 }
 0x8bf   :  { %v1082_v3 = vsel %vm267_vm9, %v1077_v1, 0  ;;  %1962 = vmatmul.msk.bf16.vlgmr.msrb.gmra.mxu1 %vm184_vm8, %v1258_v63 }
 0x8c0   :  { %1091 = vmatpush.bf16.msrb.mxu2 %v1082_v3 }
 0x8c7   :  { %1965 = vmatmul.msk.bf16.vlgmr.msra.gmra.mxu0 %vm184_vm8, %v1351_v2 }
 0x8cf   :  { %1966 = vmatmul.msk.bf16.vlgmr.msra.gmra.mxu1 %vm184_vm8, %v1374_v61 }
 0x914   :  { %v1020_v4 = vpop.f32.mrf.mxu0 }
 0x915   :  { %v1048_v60 = vmul.f32 0.35355338, %v1020_v4 }
 0x917   :  { %v1050_v5 = vadd.f32 %v2477_v26, %v1048_v60 }
 0x919   :  { %v1052_v6 = vsel %vm184_vm8, %v1050_v5, -inf }
 0x91a   :  { %1053 = vmax.xlane.f32.xlu2 %v1052_v6 }
 0x91c   :  { %v1022_v7 = vpop.f32.mrf.mxu0  ;;  %v1044_v8 = vpop.f32.mrf.mxu1 }
 0x91d   :  { %v1049_v9 = vmul.f32 0.35355338, %v1044_v8 }
 0x91f   :  { %v1051_v10 = vadd.f32 %v2484_v32, %v1049_v9 }
 0x921   :  { %v1055_v11 = vsel %vm184_vm8, %v1051_v10, -inf }
 0x922   :  { %1056 = vmax.xlane.f32.xlu0 %v1055_v11 }
 0x924   :  { %v1046_v12 = vpop.f32.mrf.mxu1  ;;  %v1137_v13 = vpop.f32.mrf.mxu0 }
 0x925   :  { %v1164_v15 = vmul.f32 0.35355338, %v1137_v13 }
 0x927   :  { %v1166_v16 = vadd.f32 %v2477_v26, %v1164_v15 }
 0x929   :  { %v1168_v17 = vsel %vm184_vm8, %v1166_v16, -inf }
 0x92a   :  { %1169 = vmax.xlane.f32.xlu1 %v1168_v17 }
 0x92c   :  { %v1139_v18 = vpop.f32.mrf.mxu0  ;;  %v1160_v19 = vpop.f32.mrf.mxu1 }
 0x92d   :  { %v1165_v20 = vmul.f32 0.35355338, %v1160_v19 }
 0x92f   :  { %v1167_v21 = vadd.f32 %v2484_v32, %v1165_v20 }
 0x931   :  { %v1171_v22 = vsel %vm184_vm8, %v1167_v21, -inf }
 0x932   :  { %1172 = vmax.xlane.f32.xlu2 %v1171_v22 }
 0x934   :  { %v1162_v23 = vpop.f32.mrf.mxu1  ;;  %v1253_v24 = vpop.f32.mrf.mxu0 }
 0x935   :  { %v1280_v25 = vmul.f32 0.35355338, %v1253_v24 }
 0x937   :  { %v1282_v27 = vadd.f32 %v2477_v26, %v1280_v25  ;;  %v2233_v26 = vld [vmem:[%s2941_s0] ss:$0 sm:$0xff]  ;;  %s2949_s0 = smov 40  }
 0x939   :  { %v1284_v30 = vsel %vm184_vm8, %v1282_v27, -inf }
 0x93a   :  { %1285 = vmax.xlane.f32.xlu0 %v1284_v30 }
 0x93c   :  { %v1255_v53 = vpop.f32.mrf.mxu0  ;;  %v1276_v31 = vpop.f32.mrf.mxu1 }
 0x93d   :  { %v1281_v33 = vmul.f32 0.35355338, %v1276_v31 }
 0x93f   :  { %v2717_v34 = vadd.f32 %v2484_v32, %v1281_v33 }
 0x941   :  { %v1287_v35 = vsel %vm184_vm8, %v2717_v34, -inf }
 0x942   :  { %1288 = vmax.xlane.f32.xlu1 %v1287_v35 }
 0x944   :  { %v1278_v54 = vpop.f32.mrf.mxu1  ;;  %v1369_v37 = vpop.f32.mrf.mxu0 }
 0x945   :  { %v1396_v38 = vmul.f32 0.35355338, %v1369_v37 }
 0x947   :  { %v2724_v39 = vadd.f32 %v2233_v26, %v1396_v38 }
 0x949   :  { %v1400_v41 = vsel %vm184_vm8, %v2724_v39, -inf }
 0x94a   :  { %1401 = vmax.xlane.f32.xlu2 %v1400_v41 }
 0x94c   :  { %v1371_v42 = vpop.f32.mrf.mxu0  ;;  %v1392_v32 = vpop.f32.mrf.mxu1 }
 0x94d   :  { %v1397_v43 = vmul.f32 0.35355338, %v1392_v32 }
 0x94f   :  { %v1399_v45 = vadd.f32 %v2234_v44, %v1397_v43 }
 0x951   :  { %v1403_v46 = vsel %vm184_vm8, %v1399_v45, -inf }
 0x952   :  { %1404 = vmax.xlane.f32.xlu0 %v1403_v46 }
 0x954   :  { %v1394_v47 = vpop.f32.mrf.mxu1 }
 0x962   :  { %1213 = vrot.lane.b32.xlu2 %v2661_v40, %s2947_s26 }
 0x966   :  { %1192 = vrot.lane.b32.xlu0 %v2655_v36, %s2947_s26 }
 0x96a   :  { %1308 = vrot.lane.b32.xlu2 %v2655_v36, %s2948_s29 }
 0x98d   :  { %v1054_v48 = vpop.xlane.xlu2 %1053 }
 0x98e   :  { %v1058_v49 = vsub.f32 %v1050_v5, %v1054_v48 }
 0x990   :  { %v1060_v50 = vmul.f32 1.442695, %v1058_v49 }
 0x992   :  { %2187 = vpow2.f32 %v1060_v50 }
 0x995   :  { %v1057_v51 = vpop.xlane.xlu0 %1056 }
 0x996   :  { %v1059_v52 = vsub.f32 %v1051_v10, %v1057_v51 }
 0x998   :  { %v2188_v55 = vpop.eup %2187  ;;  %v1062_v56 = vmul.f32 1.442695, %v1059_v52 }
 0x999   :  { %v1064_v57 = vsel %vm184_vm8, %v2188_v55, 0.0 }
 0x99a   :  { %2189 = vpow2.f32 %v1062_v56  ;;  %1065 = vadd.xlane.f32.xlu1 %v1064_v57 }
 0x99d   :  { %v1170_v58 = vpop.xlane.xlu1 %1169 }
 0x99e   :  { %v1174_v59 = vsub.f32 %v1166_v16, %v1170_v58 }
 0x9a0   :  { %v2739_v62 = vpop.eup %2189  ;;  %v1176_v63 = vmul.f32 1.442695, %v1174_v59 }
 0x9a1   :  { %v1067_v0 = vsel %vm184_vm8, %v2739_v62, 0.0 }
 0x9a2   :  { %2191 = vpow2.f32 %v1176_v63  ;;  %1068 = vadd.xlane.f32.xlu2 %v1067_v0 }
 0x9a5   :  { %v1173_v2 = vpop.xlane.xlu2 %1172 }
 0x9a6   :  { %v1175_v1 = vsub.f32 %v1167_v21, %v1173_v2 }
 0x9a8   :  { %v2192_v3 = vpop.eup %2191  ;;  %v1178_v61 = vmul.f32 1.442695, %v1175_v1 }
 0x9a9   :  { %v1180_v4 = vsel %vm184_vm8, %v2192_v3, 0.0 }
 0x9aa   :  { %2193 = vpow2.f32 %v1178_v61  ;;  %1181 = vadd.xlane.f32.xlu2 %v1180_v4 }
 0x9ad   :  { %v1286_v60 = vpop.xlane.xlu0 %1285 }
 0x9ae   :  { %v1290_v5 = vsub.f32 %v1282_v27, %v1286_v60 }
 0x9b0   :  { %v2744_v6 = vpop.eup %2193  ;;  %v1292_v7 = vmul.f32 1.442695, %v1290_v5 }
 0x9b1   :  { %v1183_v8 = vsel %vm184_vm8, %v2744_v6, 0.0 }
 0x9b2   :  { %2195 = vpow2.f32 %v1292_v7  ;;  %1184 = vadd.xlane.f32.xlu2 %v1183_v8 }
 0x9b3   :  { %1097 = vrot.lane.b32.xlu1 %v2661_v40, %s2946_s24 }
 0x9b5   :  { %v1289_v13 = vpop.xlane.xlu1 %1288 }
 0x9b6   :  { %v1291_v16 = vsub.f32 %v2717_v34, %v1289_v13 }
 0x9b8   :  { %v2750_v9 = vpop.eup %2195  ;;  %v1294_v17 = vmul.f32 1.442695, %v1291_v16 }
 0x9b9   :  { %v1296_v10 = vsel %vm184_vm8, %v2750_v9, 0.0 }
 0x9ba   :  { %1297 = vadd.xlane.f32.xlu0 %v1296_v10 }
 0x9bd   :  { %v1402_v24 = vpop.xlane.xlu2 %1401 }
 0x9be   :  { %v1406_v25 = vsub.f32 %v2724_v39, %v1402_v24 }
 0x9c0   :  { %v1408_v27 = vmul.f32 1.442695, %v1406_v25 }
 0x9c5   :  { %v1405_v11 = vpop.xlane.xlu0 %1404  ;;  %v1214_v31 = vpop.permute.xlu2 %1213 }
 0x9c6   :  { %v1407_v12 = vsub.f32 %v1399_v45, %v1405_v11  ;;  %v1219_v45 = vsel %vm267_vm9, %v1214_v31, 0 }
 0x9c8   :  { %v1410_v15 = vmul.f32 1.442695, %v1407_v12 }
 0x9ca   :  { %2197 = vpow2.f32 %v1410_v15  ;;  %1329 = vrot.lane.b32.xlu2 %v2661_v40, %s2948_s29 }
 0x9cb   :  { %2199 = vpow2.f32 %v1294_v17 }
 0x9cc   :  { %2201 = vpow2.f32 %v1408_v27 }
 0x9cd   :  { %v1309_v33 = vpop.permute.xlu2 %1308 }
 0x9d0   :  { %v2757_v18 = vpop.eup %2197 }
 0x9d1   :  { %v1415_v19 = vsel %vm184_vm8, %v2757_v18, 0.0  ;;  %v2200_v21 = vpop.eup %2199 }
 0x9d2   :  { %1416 = vadd.xlane.f32.xlu0 %v1415_v19  ;;  %v1299_v23 = vsel %vm184_vm8, %v2200_v21, 0.0  ;;  %v2766_v30 = vpop.eup %2201 }
 0x9d3   :  { %v1412_v53 = vsel %vm184_vm8, %v2766_v30, 0.0 }
 0x9d8   :  { %v1193_v20 = vpop.permute.xlu0 %1192 }
 0x9d9   :  { %v1198_v22 = vsel %vm267_vm9, %v1193_v20, 0 }
 0x9da   :  { %1207 = vmatpush.bf16.msra.mxu2 %v1198_v22 }
 0x9dd   :  { %1300 = vadd.xlane.f32.xlu1 %v1299_v23 }
 0x9e6   :  { %1445 = vrot.lane.b32.xlu0 %v2661_v40, %s2949_s0  ;;  %v1314_v40 = vsel %vm267_vm9, %v1309_v33, 0 }
 0x9f3   :  { %1413 = vadd.xlane.f32.xlu2 %v1412_v53 }
 0x9f6   :  { %1424 = vrot.lane.b32.xlu1 %v2655_v36, %s2949_s0 }
 0xa0d   :  { %v1066_v34 = vpop.xlane.xlu1 %1065 }
 0xa0e   :  { %2203 = vrcp.f32 %v1066_v34  ;;  %v2058_v34 = vld [vmem:[%s2895_s6 + $0x18] sm:$0xff] }
 0xa0f   :  { %1528 = vmatpush.bf16.msrb.mxu0 %v2058_v34 }
 0xa14   :  { %v2204_v35 = vpop.eup %2203 }
 0xa15   :  { %v1072_v54 = vmul.f32 %v2204_v35, %v2188_v55  ;;  %v1069_v37 = vpop.xlane.xlu2 %1068  ;;  %v2057_v35 = vld [vmem:[%s2895_s6 + $0x10] sm:$0xff] }
 0xa16   :  { %2205 = vrcp.f32 %v1069_v37  ;;  %1529 = vmatpush.bf16.msrb.mxu0 %v2057_v35 }
 0xa17   :  { %v1074_v38 = vpack.c.bf16 %v1072_v54, %v1072_v54 }
 0xa19   :  { %1955 = vmatmul.msk.bf16.vlgmr.msrb.gmra.mxu2 %vm184_vm8, %v1074_v38 }
 0xa1a   :  { %1323 = vmatpush.bf16.msrb.mxu2 %v1314_v40 }
 0xa1c   :  { %v2206_v39 = vpop.eup %2205 }
 0xa1d   :  { %v1182_v26 = vpop.xlane.xlu2 %1181  ;;  %v1073_v36 = vmul.f32 %v2206_v39, %v2739_v62 }
 0xa1e   :  { %2207 = vrcp.f32 %v1182_v26 }
 0xa1f   :  { %v1075_v47 = vpack.c.bf16 %v1073_v36, %v1073_v36 }
 0xa24   :  { %v2208_v41 = vpop.eup %2207 }
 0xa25   :  { %v1188_v42 = vmul.f32 %v2208_v41, %v2192_v3  ;;  %v1185_v32 = vpop.xlane.xlu2 %1184  ;;  %v1098_v43 = vpop.permute.xlu1 %1097 }
 0xa26   :  { %v1103_v44 = vsel %vm267_vm9, %v1098_v43, 0  ;;  %2209 = vrcp.f32 %v1185_v32 }
 0xa27   :  { %v1190_v46 = vpack.c.bf16 %v1188_v42, %v1188_v42  ;;  %1112 = vmatpush.bf16.msra.mxu3 %v1103_v44 }
 0xa29   :  { %1959 = vmatmul.msk.bf16.vlgmr.msra.gmra.mxu2 %vm184_vm8, %v1190_v46 }
 0xa2a   :  { %1956 = vmatmul.msk.bf16.vlgmr.msra.gmra.mxu3 %vm184_vm8, %v1075_v47 }
 0xa2b   :  { %1228 = vmatpush.bf16.msrb.mxu3 %v1219_v45 }
 0xa2c   :  { %v2210_v51 = vpop.eup %2209 }
 0xa2d   :  { %v1298_v48 = vpop.xlane.xlu0 %1297  ;;  %v1330_v49 = vpop.permute.xlu2 %1329  ;;  %v1189_v55 = vmul.f32 %v2210_v51, %v2744_v6 }
 0xa2e   :  { %2211 = vrcp.f32 %v1298_v48  ;;  %v1335_v50 = vsel %vm267_vm9, %v1330_v49, 0  ;;  %v2128_v49 = vld [vmem:[%s2896_s7 + $0x1] ss:$0 sm:$0xff] }
 0xa2f   :  { %1344 = vmatpush.bf16.msra.mxu3 %v1335_v50  ;;  %v1191_v58 = vpack.c.bf16 %v1189_v55, %v1189_v55 }
 0xa34   :  { %v2212_v52 = vpop.eup %2211 }
 0xa35   :  { %v1304_v56 = vmul.f32 %v2212_v52, %v2750_v9 }
 0xa37   :  { %v1306_v57 = vpack.c.bf16 %v1304_v56, %v1304_v56 }
 0xa39   :  { %1963 = vmatmul.msk.bf16.vlgmr.msrb.gmra.mxu2 %vm184_vm8, %v1306_v57 }
 0xa3a   :  { %1960 = vmatmul.msk.bf16.vlgmr.msrb.gmra.mxu3 %vm184_vm8, %v1191_v58 }
 0xa45   :  { %v1417_v59 = vpop.xlane.xlu0 %1416 }
 0xa50   :  { %v1301_v62 = vpop.xlane.xlu1 %1300 }
 0xa51   :  { %2213 = vrcp.f32 %v1301_v62 }
 0xa52   :  { %2215 = vrcp.f32 %v1417_v59 }
 0xa57   :  { %v2214_v63 = vpop.eup %2213 }
 0xa58   :  { %v1305_v0 = vmul.f32 %v2214_v63, %v2200_v21  ;;  %v1446_v2 = vpop.permute.xlu0 %1445  ;;  %v2216_v61 = vpop.eup %2215 }
 0xa59   :  { %v1451_v1 = vsel %vm267_vm9, %v1446_v2, 0  ;;  %v1421_v4 = vmul.f32 %v2216_v61, %v2757_v18 }
 0xa5a   :  { %v1307_v3 = vpack.c.bf16 %v1305_v0, %v1305_v0  ;;  %1460 = vmatpush.bf16.msrb.mxu3 %v1451_v1 }
 0xa5b   :  { %v1423_v7 = vpack.c.bf16 %v1421_v4, %v1421_v4 }
 0xa5c   :  { %1964 = vmatmul.msk.bf16.vlgmr.msra.gmra.mxu3 %vm184_vm8, %v1307_v3 }
 0xa66   :  { %v1414_v60 = vpop.xlane.xlu2 %1413 }
 0xa67   :  { %2217 = vrcp.f32 %v1414_v60  ;;  %v2060_v60 = vld [vmem:[%s2899_s10 + $0x18] sm:$0xff] }
 0xa68   :  { %v1425_v5 = vpop.permute.xlu1 %1424  ;;  %1632 = vmatpush.bf16.msrb.mxu1 %v2060_v60 }
 0xa69   :  { %v1430_v6 = vsel %vm267_vm9, %v1425_v5, 0 }
 0xa6a   :  { %1439 = vmatpush.bf16.msra.mxu2 %v1430_v6 }
 0xa6c   :  { %1968 = vmatmul.msk.bf16.vlgmr.msrb.gmra.mxu3 %vm184_vm8, %v1423_v7 }
 0xa6d   :  { %v2218_v8 = vpop.eup %2217 }
 0xa6e   :  { %v1420_v9 = vmul.f32 %v2218_v8, %v2766_v30 }
 0xa70   :  { %v1422_v10 = vpack.c.bf16 %v1420_v9, %v1420_v9 }
 0xa72   :  { %1967 = vmatmul.msk.bf16.vlgmr.msra.gmra.mxu2 %vm184_vm8, %v1422_v10 }
 0xa9c   :  { %v1093_v11 = vpop.f32.mrf.mxu2 }
 0xaa4   :  { %v1095_v12 = vpop.f32.mrf.mxu2 }
 0xaac   :  { %v1209_v13 = vpop.f32.mrf.mxu2 }
 0xaad   :  { %v1114_v15 = vpop.f32.mrf.mxu3 }
 0xab4   :  { %v1211_v16 = vpop.f32.mrf.mxu2 }
 0xab5   :  { %v1116_v17 = vpop.f32.mrf.mxu3 }
 0xabc   :  { %v1325_v18 = vpop.f32.mrf.mxu2 }
 0xabd   :  { %v1230_v19 = vpop.f32.mrf.mxu3 }
 0xabe   :  { %v2100_v20 = vpack.i.bf16 %v1230_v19, %v1209_v13 }
 0xac0   :  { %2101 = vrot.lane.b32.xlu1 %v2100_v20, %s2950_s21 }
 0xac4   :  { %v1327_v21 = vpop.f32.mrf.mxu2 }
 0xac5   :  { %v1232_v22 = vpop.f32.mrf.mxu3 }
 0xadf   :  { %v1346_v23 = vpop.f32.mrf.mxu3 }
 0xae0   :  { %v2105_v24 = vpack.i.bf16 %v1346_v23, %v1325_v18 }
 0xae2   :  { %2106 = vrot.lane.b32.xlu0 %v2105_v24, %s2951_s22  ;;  %s1870_s22 = sshll.u32 %s2909_s20, 4  ;;  %s1871_s22 = int_to_ptr.hbm [resolvable:$true] %s1870_s22 }
 0xae7   :  { %v1348_v25 = vpop.f32.mrf.mxu3 }
 0xaef   :  { %v1462_v27 = vpop.f32.mrf.mxu3 }
 0xaf5   :  { %v1441_v30 = vpop.f32.mrf.mxu2 }
 0xaf6   :  { %v2110_v53 = vpack.i.bf16 %v1462_v27, %v1441_v30 }
 0xaf7   :  { %v1464_v31 = vpop.f32.mrf.mxu3 }
 0xaf8   :  { %2111 = vrot.lane.b32.xlu2 %v2110_v53, %s2952_s23  ;;  %v2129_v53 = vld [vmem:[%s2897_s8 + $0x1] ss:$0 sm:$0xff]  ;;  %s2276_s8 = smov [#allocation2]  }
 0xaf9   :  { %s1868_s0 = sshll.u32 %s2276_s8, 4  ;;  %s1869_s0 = int_to_ptr.vmem [resolvable:$true] %s1868_s0 }
 0xafd   :  { %v1443_v33 = vpop.f32.mrf.mxu2 }
 0xb32   :  { %v2102_v54 = vpop.permute.xlu1 %2101 }
 0xb33   :  { %v2104_v37 = vunpack.i.h.bf16 %v2102_v54  ;;  %v2103_v38 = vunpack.i.l.bf16 %v2102_v54 }
 0xb35   :  { %v1491_v36 = vsel %vm184_vm8, %v1114_v15, %v2104_v37  ;;  %v1490_v42 = vsel %vm184_vm8, %v1093_v11, %v2103_v38  ;;  %v2130_v38 = vld [vmem:[%s2898_s9 + $0x1] ss:$0 sm:$0xff] }
 0xb52   :  { %v2112_v40 = vpop.permute.xlu2 %2111 }
 0xb53   :  { %v2114_v32 = vunpack.i.h.bf16 %v2112_v40  ;;  %v2113_v43 = vunpack.i.l.bf16 %v2112_v40 }
 0xb54   :  { %v2107_v26 = vpop.permute.xlu0 %2106 }
 0xb55   :  { %v2109_v39 = vunpack.i.h.bf16 %v2107_v26  ;;  %v2108_v41 = vunpack.i.l.bf16 %v2107_v26 }
 0xb57   :  { %v1492_v44 = vsel %vm679_vm10, %v1490_v42, %v2108_v41  ;;  %v1493_v45 = vsel %vm679_vm10, %v1491_v36, %v2109_v39  ;;  %v2064_v36 = vld [vmem:[%s2901_s12 + $0x38] sm:$0xff]  ;;  %v2063_v42 = vld [vmem:[%s2901_s12 + $0x30] sm:$0xff] }
 0xb58   :  { %v1494_v46 = vsel %vm682_vm11, %v1492_v44, %v2113_v43  ;;  %v1495_v47 = vsel %vm682_vm11, %v1493_v45, %v2114_v32  ;;  %1704 = vmatpush.bf16.msrb.mxu2 %v2064_v36  ;;  %v2062_v32 = vld [vmem:[%s2901_s12 + $0x28] sm:$0xff]  ;;  %v2131_v43 = vld [vmem:[%s2900_s11 + $0x1] ss:$0 sm:$0xff] }
 0xb59   :  { %v1501_v48 = vpack.c.bf16 %v1495_v47, %v1494_v46  ;;  %v2061_v45 = vld [vmem:[%s2901_s12 + $0x20] sm:$0xff] }
 0xb5b   :  { %1982 = vmatmul.msk.bf16.vlgmr.msrb.gmra.mxu0 %vm73_vm0, %v1501_v48 }
 0xb5c   :  { %1705 = vmatpush.bf16.msrb.mxu2 %v2063_v42 }
 0xb60   :  { %1706 = vmatpush.bf16.msrb.mxu2 %v2062_v32 }
 0xb64   :  { %1707 = vmatpush.bf16.msrb.mxu2 %v2061_v45  ;;  %v2133_v45 = vld [vmem:[%s2903_s14 + $0x1] ss:$0 sm:$0xff] }
 0xbd8   :  { %v1531_v50 = vpop.f32.mrf.mxu0 }
 0xbd9   :  { %v1532_v51 = vadd.f32 %v2128_v49, %v1531_v50 }
 0xbdb   :  { %v1536_v52 = vadd.f32 %v1532_v51, %v2645_v28 }
 0xbdd   :  { %v1542_v55 = vsel %vm73_vm0, %v1536_v52, 0.0  ;;  %v1550_v56 = vmul.f32 %v1536_v52, %v1536_v52 }
 0xbde   :  { %1543 = vadd.xlane.f32.xlu1 %v1542_v55 }
 0xbdf   :  { %v1552_v57 = vsel %vm73_vm0, %v1550_v56, 0.0 }
 0xbe0   :  { %v1533_v58 = vpop.f32.mrf.mxu0  ;;  %1553 = vadd.xlane.f32.xlu2 %v1552_v57 }
 0xbe1   :  { %v1534_v59 = vadd.f32 %v2128_v49, %v1533_v58 }
 0xbe3   :  { %v1537_v62 = vadd.f32 %v1534_v59, %v2647_v29  ;;  %v2059_v29 = vld [vmem:[%s2899_s10 + $0x10] sm:$0xff] }
 0xbe4   :  { %1633 = vmatpush.bf16.msrb.mxu1 %v2059_v29 }
 0xbe5   :  { %v1545_v63 = vsel %vm73_vm0, %v1537_v62, 0.0  ;;  %v1551_v0 = vmul.f32 %v1537_v62, %v1537_v62 }
 0xbe6   :  { %1546 = vadd.xlane.f32.xlu0 %v1545_v63 }
 0xbe7   :  { %v1555_v2 = vsel %vm73_vm0, %v1551_v0, 0.0 }
 0xbe8   :  { %1556 = vadd.xlane.f32.xlu1 %v1555_v2 }
 0xc51   :  { %v1544_v1 = vpop.xlane.xlu1 %1543 }
 0xc52   :  { %v1548_v28 = vmul.f32 %v1544_v1, %v2397_v14 }
 0xc53   :  { %v1554_v3 = vpop.xlane.xlu2 %1553 }
 0xc54   :  { %v1560_v61 = vmul.f32 %v1548_v28, %v1548_v28  ;;  %v1558_v4 = vmul.f32 %v1554_v3, %v2397_v14  ;;  %v1564_v27 = vsub.f32 %v1536_v52, %v1548_v28 }
 0xc56   :  { %v1562_v5 = vsub.f32 %v1558_v4, %v1560_v61 }
 0xc58   :  { %v1566_v6 = vadd.f32 1e-12, %v1562_v5  ;;  %v2132_v5 = vld [vmem:[%s2902_s13 + $0x1] ss:$0 sm:$0xff] }
 0xc59   :  { %v1547_v7 = vpop.xlane.xlu0 %1546 }
 0xc5a   :  { %2219 = vrsqrt.f32 %v1566_v6  ;;  %v1549_v8 = vmul.f32 %v1547_v7, %v2397_v14  ;;  %vm1574_vm9 = vweird.f32 %v1566_v6 }
 0xc5b   :  { %v1557_v9 = vpop.xlane.xlu1 %1556 }
 0xc5c   :  { %v1561_v10 = vmul.f32 %v1549_v8, %v1549_v8  ;;  %v1559_v11 = vmul.f32 %v1557_v9, %v2397_v14  ;;  %v1565_v34 = vsub.f32 %v1537_v62, %v1549_v8 }
 0xc5e   :  { %v1563_v12 = vsub.f32 %v1559_v11, %v1561_v10 }
 0xc60   :  { %v2220_v13 = vpop.eup %2219  ;;  %v1567_v15 = vadd.f32 1e-12, %v1563_v12 }
 0xc61   :  { %v1569_v16 = vmul.f32 %v2220_v13, %v1566_v6  ;;  %vm1575_vm8 = vweird.f32 %v2220_v13 }
 0xc62   :  { %2221 = vrsqrt.f32 %v1567_v15  ;;  %vm1576_vm10 = vmor %vm1574_vm9, %vm1575_vm8  ;;  %vm1584_vm14 = vweird.f32 %v1567_v15 }
 0xc63   :  { %v1570_v17 = vmul.f32 %v2220_v13, %v1569_v16 }
 0xc65   :  { %v1571_v18 = vmul.f32 0.5, %v1570_v17 }
 0xc67   :  { %v1572_v19 = vsub.f32 1.5, %v1571_v18 }
 0xc68   :  { %v2222_v20 = vpop.eup %2221 }
 0xc69   :  { %v1573_v21 = vmul.f32 %v2220_v13, %v1572_v19  ;;  %v1579_v22 = vmul.f32 %v2222_v20, %v1567_v15  ;;  %vm1585_vm11 = vweird.f32 %v2222_v20 }
 0xc6a   :  { %vm1586_vm15 = vmor %vm1584_vm14, %vm1585_vm11 }
 0xc6b   :  { %v1580_v23 = vmul.f32 %v2222_v20, %v1579_v22  ;;  %v1577_v24 = vsel %vm1576_vm10, %v2220_v13, %v1573_v21 }
 0xc6c   :  { %v1588_v31 = vmul.f32 %v1577_v24, %v1564_v27 }
 0xc6d   :  { %v1581_v25 = vmul.f32 0.5, %v1580_v23 }
 0xc6e   :  { %v1593_v54 = vmul.f32 %v2129_v53, %v1588_v31 }
 0xc6f   :  { %v1582_v30 = vsub.f32 1.5, %v1581_v25 }
 0xc70   :  { %v1598_v26 = vadd.f32 %v2130_v38, %v1593_v54 }
 0xc71   :  { %v1583_v33 = vmul.f32 %v2222_v20, %v1582_v30 }
 0xc73   :  { %v1587_v35 = vsel %vm1586_vm15, %v2222_v20, %v1583_v33 }
 0xc74   :  { %v1589_v37 = vmul.f32 %v1587_v35, %v1565_v34  ;;  %v2065_v34 = vld [vmem:[%s2905_s16] sm:$0xff] }
 0xc76   :  { %v1594_v40 = vmul.f32 %v2129_v53, %v1589_v37  ;;  %v2066_v53 = vld [vmem:[%s2905_s16 + $0x8] sm:$0xff] }
 0xc77   :  { %1817 = vmatpush.bf16.msra.mxu3 %v2066_v53 }
 0xc78   :  { %v1599_v39 = vadd.f32 %v2130_v38, %v1594_v40 }
 0xc7a   :  { %v1605_v41 = vpack.c.bf16 %v1599_v39, %v1598_v26 }
 0xc7b   :  { %1818 = vmatpush.bf16.msra.mxu3 %v2065_v34 }
 0xc7c   :  { %1998 = vmatmul.msk.bf16.vlgmr.msrb.gmra.mxu1 %vm73_vm0, %v1605_v41 }
 0xcf9   :  { %v1635_v44 = vpop.f32.mrf.mxu1 }
 0xcfa   :  { %v1636_v46 = vadd.f32 %v2131_v43, %v1635_v44 }
 0xcfc   :  { %v1640_v47 = vmul.f32 %v1636_v46, %v1636_v46 }
 0xcfe   :  { %v1642_v48 = vmul.f32 %v1640_v47, %v1636_v46 }
 0xd00   :  { %v1644_v49 = vmul.f32 0.044715, %v1642_v48 }
 0xd01   :  { %v1637_v50 = vpop.f32.mrf.mxu1 }
 0xd02   :  { %v1646_v51 = vadd.f32 %v1644_v49, %v1636_v46  ;;  %v1638_v52 = vadd.f32 %v2131_v43, %v1637_v50  ;;  %v2134_v50 = vld [vmem:[%s2904_s15 + $0x1] ss:$0 sm:$0xff] }
 0xd04   :  { %v1648_v55 = vmul.f32 0.7978846, %v1646_v51  ;;  %v1641_v56 = vmul.f32 %v1638_v52, %v1638_v52 }
 0xd06   :  { %v1643_v57 = vmul.f32 %v1641_v56, %v1638_v52  ;;  %2223 = vtanh.f32 %v1648_v55 }
 0xd08   :  { %v1645_v58 = vmul.f32 0.044715, %v1643_v57 }
 0xd0a   :  { %v1647_v59 = vadd.f32 %v1645_v58, %v1638_v52 }
 0xd0c   :  { %v1649_v62 = vmul.f32 0.7978846, %v1647_v59  ;;  %v2224_v63 = vpop.eup %2223 }
 0xd0d   :  { %v1652_v0 = vadd.f32 1.0, %v2224_v63 }
 0xd0e   :  { %2225 = vtanh.f32 %v1649_v62 }
 0xd0f   :  { %v1654_v1 = vmul.f32 0.5, %v1652_v0 }
 0xd11   :  { %v1656_v61 = vmul.f32 %v1654_v1, %v1636_v46 }
 0xd14   :  { %v2226_v2 = vpop.eup %2225 }
 0xd15   :  { %v1653_v28 = vadd.f32 1.0, %v2226_v2 }
 0xd17   :  { %v1655_v3 = vmul.f32 0.5, %v1653_v28 }
 0xd19   :  { %v1657_v4 = vmul.f32 %v1655_v3, %v1638_v52  ;;  %v2068_v3 = vld [vmem:[%s2907_s18 + $0x8] sm:$0xff] }
 0xd1a   :  { %1855 = vmatpush.bf16.msra.mxu0 %v2068_v3 }
 0xd1b   :  { %v1667_v60 = vpack.c.bf16 %v1657_v4, %v1656_v61  ;;  %v2067_v61 = vld [vmem:[%s2907_s18] sm:$0xff] }
 0xd1c   :  { %v2135_v4 = vld [vmem:[%s2906_s17] ss:$0 sm:$0xff] }
 0xd1d   :  { %2024 = vmatmul.msk.bf16.vlgmr.msrb.gmra.mxu2 %vm878_vm3, %v1667_v60 }
 0xd1e   :  { %1856 = vmatpush.bf16.msra.mxu0 %v2067_v61 }
 0xda0   :  { %v1709_v29 = vpop.f32.mrf.mxu2 }
 0xda1   :  { %v1710_v6 = vadd.f32 %v2132_v5, %v1709_v29 }
 0xda3   :  { %v1714_v7 = vadd.f32 %v1710_v6, %v1598_v26 }
 0xda5   :  { %v1720_v8 = vsel %vm73_vm0, %v1714_v7, 0.0  ;;  %v1728_v11 = vmul.f32 %v1714_v7, %v1714_v7 }
 0xda6   :  { %1721 = vadd.xlane.f32.xlu1 %v1720_v8  ;;  %v2136_v8 = vld [vmem:[%s2908_s19] ss:$0 sm:$0xff] }
 0xda7   :  { %v1730_v15 = vsel %vm73_vm0, %v1728_v11, 0.0 }
 0xda8   :  { %v1711_v9 = vpop.f32.mrf.mxu2 }
 0xda9   :  { %v1712_v10 = vadd.f32 %v2132_v5, %v1711_v9 }
 0xdab   :  { %v1715_v12 = vadd.f32 %v1712_v10, %v1599_v39 }
 0xdad   :  { %v1723_v13 = vsel %vm73_vm0, %v1715_v12, 0.0  ;;  %v1729_v16 = vmul.f32 %v1715_v12, %v1715_v12 }
 0xdae   :  { %1724 = vadd.xlane.f32.xlu0 %v1723_v13  ;;  %1731 = vadd.xlane.f32.xlu1 %v1730_v15 }
 0xdaf   :  { %v1733_v17 = vsel %vm73_vm0, %v1729_v16, 0.0 }
 0xdb6   :  { %1734 = vadd.xlane.f32.xlu0 %v1733_v17 }
 0xe19   :  { %v1722_v18 = vpop.xlane.xlu1 %1721 }
 0xe1a   :  { %v1726_v19 = vmul.f32 %v1722_v18, %v2397_v14 }
 0xe1c   :  { %v1738_v22 = vmul.f32 %v1726_v19, %v1726_v19  ;;  %v1742_v43 = vsub.f32 %v1714_v7, %v1726_v19 }
 0xe21   :  { %v1725_v20 = vpop.xlane.xlu0 %1724  ;;  %v1732_v21 = vpop.xlane.xlu1 %1731 }
 0xe22   :  { %v1736_v23 = vmul.f32 %v1732_v21, %v2397_v14  ;;  %v1727_v25 = vmul.f32 %v1725_v20, %v2397_v14 }
 0xe24   :  { %v1740_v24 = vsub.f32 %v1736_v23, %v1738_v22  ;;  %v1739_v31 = vmul.f32 %v1727_v25, %v1727_v25  ;;  %v1743_v49 = vsub.f32 %v1715_v12, %v1727_v25 }
 0xe26   :  { %v1744_v27 = vadd.f32 1e-12, %v1740_v24 }
 0xe28   :  { %2227 = vrsqrt.f32 %v1744_v27  ;;  %vm1752_vm2 = vweird.f32 %v1744_v27 }
 0xe29   :  { %v1735_v30 = vpop.xlane.xlu0 %1734 }
 0xe2a   :  { %v1737_v33 = vmul.f32 %v1735_v30, %v2397_v14 }
 0xe2c   :  { %v1741_v35 = vsub.f32 %v1737_v33, %v1739_v31 }
 0xe2e   :  { %v2228_v54 = vpop.eup %2227  ;;  %v1745_v37 = vadd.f32 1e-12, %v1741_v35 }
 0xe2f   :  { %v1747_v38 = vmul.f32 %v2228_v54, %v1744_v27  ;;  %vm1753_vm1 = vweird.f32 %v2228_v54 }
 0xe30   :  { %2229 = vrsqrt.f32 %v1745_v37  ;;  %vm1754_vm3 = vmor %vm1752_vm2, %vm1753_vm1  ;;  %vm1762_vm5 = vweird.f32 %v1745_v37 }
 0xe31   :  { %v1748_v40 = vmul.f32 %v2228_v54, %v1747_v38 }
 0xe33   :  { %v1749_v26 = vmul.f32 0.5, %v1748_v40 }
 0xe35   :  { %v1750_v39 = vsub.f32 1.5, %v1749_v26 }
 0xe36   :  { %v2230_v41 = vpop.eup %2229 }
 0xe37   :  { %v1751_v36 = vmul.f32 %v2228_v54, %v1750_v39  ;;  %v1757_v42 = vmul.f32 %v2230_v41, %v1745_v37  ;;  %vm1763_vm4 = vweird.f32 %v2230_v41 }
 0xe38   :  { %vm1764_vm6 = vmor %vm1762_vm5, %vm1763_vm4 }
 0xe39   :  { %v1755_v14 = vsel %vm1754_vm3, %v2228_v54, %v1751_v36  ;;  %v1758_v32 = vmul.f32 %v2230_v41, %v1757_v42 }
 0xe3a   :  { %v1766_v46 = vmul.f32 %v1755_v14, %v1742_v43 }
 0xe3b   :  { %v1759_v44 = vmul.f32 0.5, %v1758_v32 }
 0xe3c   :  { %v1771_v51 = vmul.f32 %v2133_v45, %v1766_v46 }
 0xe3d   :  { %v1760_v47 = vsub.f32 1.5, %v1759_v44 }
 0xe3e   :  { %v1776_v56 = vadd.f32 %v2134_v50, %v1771_v51 }
 0xe3f   :  { %v1761_v48 = vmul.f32 %v2230_v41, %v1760_v47 }
 0xe40   :  { %v1782_v59 = vpack.c.bf16 %v1776_v56, %v1776_v56 }
 0xe41   :  { %v1765_v52 = vsel %vm1764_vm6, %v2230_v41, %v1761_v48 }
 0xe42   :  { %v1767_v55 = vmul.f32 %v1765_v52, %v1743_v49  ;;  %v1790_v0 = vunpack.c.l.b16 %v1782_v59 }
 0xe44   :  { %v1772_v57 = vmul.f32 %v2133_v45, %v1767_v55 }
 0xe46   :  { %v1777_v58 = vadd.f32 %v2134_v50, %v1772_v57 }
 0xe48   :  { %v1783_v62 = vpack.c.bf16 %v1777_v58, %v1777_v58 }
 0xe4a   :  { %v1791_v63 = vunpack.c.l.b16 %v1783_v62 }
 0xe4c   :  { %v1792_v2 = vrot.slane %v1791_v63, 7 }
 0xe4e   :  { %v1794_v1 = vsel %vm1793_vm7, %v1792_v2, %v1790_v0 }
 0xe4f   :  { %v1795_v28 = vpack.c.b16 %v1794_v1, %v1794_v1 }
 0xe51   :  { %2035 = vmatmul.msk.bf16.vlgmr.msra.gmra.mxu3 %vm73_vm0, %v1795_v28 }
 0xed4   :  { %v1820_v60 = vpop.f32.mrf.mxu3 }
 0xed5   :  { %v1821_v5 = vadd.f32 %v2135_v4, %v1820_v60 }
 0xed7   :  { %2231 = vtanh.f32 %v1821_v5 }
 0xedc   :  { %v1822_v29 = vpop.f32.mrf.mxu3 }
 0xedd   :  { %v2232_v6 = vpop.eup %2231 }
 0xede   :  { %v1829_v7 = vpack.c.bf16 %v2232_v6, %v2232_v6 }
 0xee0   :  { %2044 = vmatmul.msk.bf16.vlgmr.msra.gmra.mxu0 %vm73_vm0, %v1829_v7 }
 0xf5d   :  { %v1858_v9 = vpop.f32.mrf.mxu0 }
 0xf5e   :  { %v1859_v10 = vadd.f32 %v2136_v8, %v1858_v9 }
 0xf60   :  { %1862 = vst [vmem:[#allocation2] sm:$0x3] %v1859_v10 }
 0xf61   :  { %1873 = dma.vmem_to_hbm [thread:$0]  %s1869_s0, 32, %s1871_s22, [#allocation3]  }
 0xf65   :  { %v1860_v11 = vpop.f32.mrf.mxu0 }
 0xf66   :  { %2259 = dma.done.wait [#allocation3], 32  }
 0xf67   :  { %2260 = vsyncadd [#allocation3], 4294967264 }
 0xf68   :  { %1878 = vsyncpa [#allocation3], 1 }

</bundles_post_ra>
